<compile_context>
chip_gen: v7x
topology: tpu7x:2x2x1
jax: 0.10.0
libtpu: 0.0.40
codegen_flags: <defaults>
</compile_context>

<pallas_src>
import functools

import jax
import jax.numpy as jnp
from jax.experimental import pallas as pl
from jax.experimental.pallas import tpu as pltpu


_MM_DTYPE = jnp.bfloat16      # MXU operand dtype (f32 accumulation everywhere)
_LN_EPS = 1e-5                # torch.nn.LayerNorm default
_SQRT_HALF = 0.7071067811865476


# ----------------------------- in-kernel helpers ----------------------------


def _layer_norm(x, g, b, eps):
    """LayerNorm over the last dim, biased variance (matches torch)."""
    mu = jnp.mean(x, axis=-1, keepdims=True)
    var = jnp.mean(jnp.square(x - mu), axis=-1, keepdims=True)
    return (x - mu) * jax.lax.rsqrt(var + eps) * g + b


def _erf_poly(x):
    # TODO(synk): erf evaluated via Abramowitz&Stegun 7.1.26 (|err| <= 1.5e-7)
    # inside the kernel instead of relying on an erf lowering in Mosaic; this
    # matches torch.nn.GELU() (exact erf form) within float32 rounding.
    p = 0.3275911
    a1, a2, a3, a4, a5 = (0.254829592, -0.284496736, 1.421413741,
                          -1.453152027, 1.061405429)
    ax = jnp.abs(x)
    t = 1.0 / (1.0 + p * ax)
    poly = ((((a5 * t + a4) * t + a3) * t + a2) * t + a1) * t
    y = 1.0 - poly * jnp.exp(-(ax * ax))
    return jnp.where(x >= 0, y, -y)


def _gelu_exact(x):
    return 0.5 * x * (1.0 + _erf_poly(x * _SQRT_HALF))


# ------------------------------ Pallas kernels ------------------------------


def _patch_embed_kernel(p_ref, w_ref, add_ref, o_ref):
    # p_ref: (1, seq, patch_dim) with a zero row in the cls slot.
    # add_ref row 0 = cls_token + pos[0]; rows 1.. = pos[i] + patch bias.
    patches = p_ref[0].astype(_MM_DTYPE)
    emb = jnp.dot(patches, w_ref[...], preferred_element_type=jnp.float32)
    o_ref[0] = emb + add_ref[...]


def _attn_block_kernel(x_ref, g_ref, bln_ref, qkvw_ref, outw_ref, outb_ref,
                       o_ref, *, heads, dim_head, scale, eps):
    inner = heads * dim_head
    x = x_ref[0]                                            # (seq, dim) f32

    # PreNorm
    y = _layer_norm(x, g_ref[...], bln_ref[...], eps)
    yc = y.astype(_MM_DTYPE)

    # QKV projection (no bias in the reference's to_qkv).
    qkv = jnp.dot(yc, qkvw_ref[...], preferred_element_type=jnp.float32)

    dots = []
    vs = []
    for h in range(heads):
        lo = h * dim_head
        q_h = qkv[:, lo:lo + dim_head].astype(_MM_DTYPE)
        k_h = qkv[:, inner + lo:inner + lo + dim_head].astype(_MM_DTYPE)
        v_h = qkv[:, 2 * inner + lo:2 * inner + lo + dim_head]
        d_h = jax.lax.dot_general(                         # q @ k^T, no transpose
            q_h, k_h, (((1,), (1,)), ((), ())),
            preferred_element_type=jnp.float32) * scale
        dots.append(d_h)
        vs.append(v_h)

    # NOTE: the reference module applies nn.Softmax(dim=1) on (b, h, i, j),
    # i.e. softmax over the HEADS axis. Reproduced exactly here as an
    # elementwise (per (i, j)) softmax across the per-head score matrices.
    m = dots[0]
    for d_h in dots[1:]:
        m = jnp.maximum(m, d_h)
    exps = [jnp.exp(d_h - m) for d_h in dots]
    denom = exps[0]
    for e_h in exps[1:]:
        denom = denom + e_h
    inv = pl.reciprocal(denom, approx=True)                # EUP, off the VALU slot

    outs = []
    for h in range(heads):
        attn_h = (exps[h] * inv).astype(_MM_DTYPE)
        out_h = jnp.dot(attn_h, vs[h].astype(_MM_DTYPE),
                        preferred_element_type=jnp.float32)  # (seq, dim_head)
        outs.append(out_h)
    merged = jnp.concatenate(outs, axis=-1).astype(_MM_DTYPE)  # 'b h n d -> b n (h d)'

    proj = jnp.dot(merged, outw_ref[...], preferred_element_type=jnp.float32)
    o_ref[0] = x + proj + outb_ref[...]                      # residual fused in


def _ff_block_kernel(x_ref, g_ref, b_ref, w1_ref, b1_ref, w2_ref, b2_ref,
                     o_ref, *, eps):
    x = x_ref[...]                                          # (tm, dim) f32
    y = _layer_norm(x, g_ref[...], b_ref[...], eps)
    h = jnp.dot(y.astype(_MM_DTYPE), w1_ref[...],
                preferred_element_type=jnp.float32) + b1_ref[...]
    h = _gelu_exact(h)                                      # exact-erf GELU, f32
    out = jnp.dot(h.astype(_MM_DTYPE), w2_ref[...],
                  preferred_element_type=jnp.float32) + b2_ref[...]
    o_ref[...] = x + out                                    # residual fused in


def _head_kernel(x_ref, g_ref, b_ref, w_ref, hb_ref, o_ref, *, eps):
    y = _layer_norm(x_ref[...], g_ref[...], b_ref[...], eps)
    o_ref[...] = jnp.dot(y.astype(_MM_DTYPE), w_ref[...],
                         preferred_element_type=jnp.float32) + hb_ref[...]


# ------------------------------ pallas_call wrappers -------------------------


def patch_embed_pallas(patches, w, add):
    b, seq, pd = patches.shape
    dim = w.shape[1]
    return pl.pallas_call(
        _patch_embed_kernel,
        out_shape=jax.ShapeDtypeStruct((b, seq, dim), jnp.float32),
        grid=(b,),
        in_specs=[
            pl.BlockSpec((1, seq, pd), lambda i: (i, 0, 0)),
            pl.BlockSpec((pd, dim), lambda i: (0, 0)),
            pl.BlockSpec((seq, dim), lambda i: (0, 0)),
        ],
        out_specs=pl.BlockSpec((1, seq, dim), lambda i: (i, 0, 0)),
        compiler_params=pltpu.CompilerParams(dimension_semantics=("parallel",)),
    )(patches, w, add.astype(jnp.float32))


def attn_block_pallas(x, ln_g, ln_b, qkv_w, out_w, out_b, *,
                      heads, dim_head, scale, eps=_LN_EPS):
    b, seq, dim = x.shape
    inner = heads * dim_head
    kernel = functools.partial(_attn_block_kernel, heads=heads,
                               dim_head=dim_head, scale=scale, eps=eps)
    return pl.pallas_call(
        kernel,
        out_shape=jax.ShapeDtypeStruct((b, seq, dim), jnp.float32),
        grid=(b,),
        in_specs=[
            pl.BlockSpec((1, seq, dim), lambda i: (i, 0, 0)),
            pl.BlockSpec((1, dim), lambda i: (0, 0)),
            pl.BlockSpec((1, dim), lambda i: (0, 0)),
            pl.BlockSpec((dim, 3 * inner), lambda i: (0, 0)),
            pl.BlockSpec((inner, dim), lambda i: (0, 0)),
            pl.BlockSpec((1, dim), lambda i: (0, 0)),
        ],
        out_specs=pl.BlockSpec((1, seq, dim), lambda i: (i, 0, 0)),
        compiler_params=pltpu.CompilerParams(dimension_semantics=("parallel",)),
    )(x, ln_g.reshape(1, dim), ln_b.reshape(1, dim), qkv_w, out_w,
      out_b.reshape(1, dim))


def ff_block_pallas(x2d, ln_g, ln_b, w1, b1, w2, b2, *, eps=_LN_EPS,
                    max_rows=256):
    M, dim = x2d.shape
    hdim = w1.shape[1]
    tm = M if M <= max_rows else max_rows       # 8-aligned row tiles for big M
    Mp = -(-M // tm) * tm
    xp = x2d if Mp == M else jnp.pad(x2d, ((0, Mp - M), (0, 0)))
    out = pl.pallas_call(
        functools.partial(_ff_block_kernel, eps=eps),
        out_shape=jax.ShapeDtypeStruct((Mp, dim), jnp.float32),
        grid=(Mp // tm,),
        in_specs=[
            pl.BlockSpec((tm, dim), lambda i: (i, 0)),
            pl.BlockSpec((1, dim), lambda i: (0, 0)),
            pl.BlockSpec((1, dim), lambda i: (0, 0)),
            pl.BlockSpec((dim, hdim), lambda i: (0, 0)),
            pl.BlockSpec((1, hdim), lambda i: (0, 0)),
            pl.BlockSpec((hdim, dim), lambda i: (0, 0)),
            pl.BlockSpec((1, dim), lambda i: (0, 0)),
        ],
        out_specs=pl.BlockSpec((tm, dim), lambda i: (i, 0)),
        compiler_params=pltpu.CompilerParams(dimension_semantics=("parallel",)),
    )(xp, ln_g.reshape(1, dim), ln_b.reshape(1, dim),
      w1, b1.reshape(1, hdim), w2, b2.reshape(1, dim))
    return out if Mp == M else out[:M]


def head_pallas(x, ln_g, ln_b, w, b, *, eps=_LN_EPS):
    m, dim = x.shape
    ncls = w.shape[1]
    return pl.pallas_call(
        functools.partial(_head_kernel, eps=eps),
        out_shape=jax.ShapeDtypeStruct((m, ncls), jnp.float32),
        grid=(1,),
        in_specs=[
            pl.BlockSpec((m, dim), lambda i: (0, 0)),
            pl.BlockSpec((1, dim), lambda i: (0, 0)),
            pl.BlockSpec((1, dim), lambda i: (0, 0)),
            pl.BlockSpec((dim, ncls), lambda i: (0, 0)),
            pl.BlockSpec((1, ncls), lambda i: (0, 0)),
        ],
        out_specs=pl.BlockSpec((m, ncls), lambda i: (0, 0)),
    )(x, ln_g.reshape(1, dim), ln_b.reshape(1, dim), w, b.reshape(1, ncls))


# ------------------------------ parameter creation ---------------------------


def _dense_init(key, fan_in, fan_out):
    # Deterministic init mirroring torch.nn.Linear's U(-1/sqrt(in), 1/sqrt(in)).
    kw, kb = jax.random.split(key)
    lim = 1.0 / float(fan_in) ** 0.5
    w = jax.random.uniform(kw, (fan_in, fan_out), jnp.float32, -lim, lim)
    b = jax.random.uniform(kb, (fan_out,), jnp.float32, -lim, lim)
    return w, b


def init_vit_params(key, cfg):
    dim = cfg["dim"]
    inner = cfg["heads"] * cfg["dim_head"]
    patch_dim = cfg["channels"] * cfg["patch_size"] ** 2
    num_patches = (cfg["image_size"] // cfg["patch_size"]) ** 2

    keys = jax.random.split(key, 4 + cfg["depth"])
    params = {}
    pw, pb = _dense_init(keys[0], patch_dim, dim)
    params["patch_w"] = pw.astype(_MM_DTYPE)
    params["patch_b"] = pb
    params["pos_embedding"] = jax.random.normal(
        keys[1], (1, num_patches + 1, dim), jnp.float32)
    params["cls_token"] = jax.random.normal(keys[2], (1, 1, dim), jnp.float32)

    layers = []
    for l in range(cfg["depth"]):
        lk = jax.random.split(keys[4 + l], 4)
        layer = {}
        layer["ln1_g"] = jnp.ones((dim,), jnp.float32)
        layer["ln1_b"] = jnp.zeros((dim,), jnp.float32)
        qkv_w, _ = _dense_init(lk[0], dim, inner * 3)        # to_qkv has no bias
        layer["qkv_w"] = qkv_w.astype(_MM_DTYPE)
        ow, ob = _dense_init(lk[1], inner, dim)
        layer["out_w"], layer["out_b"] = ow.astype(_MM_DTYPE), ob
        layer["ln2_g"] = jnp.ones((dim,), jnp.float32)
        layer["ln2_b"] = jnp.zeros((dim,), jnp.float32)
        w1, b1 = _dense_init(lk[2], dim, cfg["mlp_dim"])
        w2, b2 = _dense_init(lk[3], cfg["mlp_dim"], dim)
        layer["ff1_w"], layer["ff1_b"] = w1.astype(_MM_DTYPE), b1
        layer["ff2_w"], layer["ff2_b"] = w2.astype(_MM_DTYPE), b2
        layers.append(layer)
    params["layers"] = layers

    params["head_ln_g"] = jnp.ones((dim,), jnp.float32)
    params["head_ln_b"] = jnp.zeros((dim,), jnp.float32)
    hw, hb = _dense_init(keys[3], dim, cfg["num_classes"])
    params["head_w"], params["head_b"] = hw.astype(_MM_DTYPE), hb
    return params


# ---------------------------------- forward ----------------------------------


def vit_forward(params, img, cfg):
    b, c, H, W = img.shape
    p = cfg["patch_size"]
    dim = cfg["dim"]
    heads = cfg["heads"]
    dim_head = cfg["dim_head"]
    scale = float(dim_head) ** -0.5
    hg, wg = H // p, W // p
    n = hg * wg
    seq = n + 1

    # Rearrange 'b c (h p1)(w p2) -> b (h w)(p1 p2 c)' (layout plumbing), with a
    # zero row prepended for the cls slot; cls token, positional embedding and
    # the patch-embedding bias are folded into one additive tensor so the patch
    # embedding is a single fused matmul+add kernel (dropout p=0 -> identity).
    x = img.reshape(b, c, hg, p, wg, p).transpose(0, 2, 4, 3, 5, 1)
    x = x.reshape(b, n, p * p * c).astype(jnp.float32)
    patches = jnp.pad(x, ((0, 0), (1, 0), (0, 0)))            # (b, seq, patch_dim)

    pos = params["pos_embedding"][0, :seq]                     # (seq, dim)
    add = pos.at[0].add(params["cls_token"][0, 0])
    add = add.at[1:].add(params["patch_b"])

    x = patch_embed_pallas(patches, params["patch_w"], add)    # (b, seq, dim)

    for layer in params["layers"]:
        # PreNorm(Attention) + residual — one fused kernel.
        x = attn_block_pallas(x, layer["ln1_g"], layer["ln1_b"],
                              layer["qkv_w"], layer["out_w"], layer["out_b"],
                              heads=heads, dim_head=dim_head, scale=scale)
        # PreNorm(FeedForward) + residual — one fused kernel.
        x = ff_block_pallas(x.reshape(b * seq, dim),
                            layer["ln2_g"], layer["ln2_b"],
                            layer["ff1_w"], layer["ff1_b"],
                            layer["ff2_w"], layer["ff2_b"]).reshape(b, seq, dim)

    cls_out = x[:, 0]                                          # pool == 'cls'
    logits = head_pallas(cls_out, params["head_ln_g"], params["head_ln_b"],
                         params["head_w"], params["head_b"])
    return logits                                              # (b, num_classes)


# ----------------------------------- main -------------------------------------

if __name__ == "__main__":
    cfg = dict(
        image_size=16,
        patch_size=4,
        num_classes=10,
        dim=32,
        depth=2,
        heads=4,
        dim_head=8,
        mlp_dim=64,
        channels=3,
    )

    key = jax.random.PRNGKey(0)
    k_params, k_img = jax.random.split(key)
    params = init_vit_params(k_params, cfg)
    img = jax.random.normal(
        k_img, (2, cfg["channels"], cfg["image_size"], cfg["image_size"]),
        jnp.float32)

    run = jax.jit(lambda p, x: vit_forward(p, x, cfg))
    logits = run(params, img)
    jax.block_until_ready(logits)
    assert logits.shape == (2, cfg["num_classes"])
    assert bool(jnp.all(jnp.isfinite(logits)))
    print("KERNEL_OK")
</pallas_src>

<mosaic_0001>
module attributes {stable_mosaic.version = 11 : i64} {
  func.func @_patch_embed_kernel(%arg0: i32, %arg1: memref<1x17x48xf32, #tpu.memory_space<vmem>>, %arg2: memref<48x32xbf16, #tpu.memory_space<vmem>>, %arg3: memref<17x32xf32, #tpu.memory_space<vmem>>, %arg4: memref<1x17x32xf32, #tpu.memory_space<vmem>>) attributes {dimension_semantics = [#tpu.dimension_semantics<parallel>], iteration_bounds = array<i64: 2>, scalar_prefetch = 0 : i64, scratch_operands = 0 : i64, tpu.core_type = #tpu.core_type<tc>, window_params = [{transform_indices = @transform_0, window_bounds = array<i64: 1, 17, 48>}, {pipeline_mode = #tpu.pipeline_mode<synchronous>, transform_indices = @transform_1, window_bounds = array<i64: 48, 32>}, {pipeline_mode = #tpu.pipeline_mode<synchronous>, transform_indices = @transform_2, window_bounds = array<i64: 17, 32>}, {transform_indices = @transform_3, window_bounds = array<i64: 1, 17, 32>}]} {
    %c0 = arith.constant 0 : index
    %c0_0 = arith.constant 0 : index
    %c0_1 = arith.constant 0 : index
    %0 = vector.load %arg1[%c0, %c0_0, %c0_1] : memref<1x17x48xf32, #tpu.memory_space<vmem>>, vector<1x17x48xf32>
    %1 = vector.shape_cast %0 : vector<1x17x48xf32> to vector<17x48xf32>
    %2 = arith.truncf %1 : vector<17x48xf32> to vector<17x48xbf16>
    %c0_2 = arith.constant 0 : index
    %c0_3 = arith.constant 0 : index
    %3 = vector.load %arg2[%c0_2, %c0_3] : memref<48x32xbf16, #tpu.memory_space<vmem>>, vector<48x32xbf16>
    %cst = arith.constant dense<0.000000e+00> : vector<17x32xf32>
    %4 = tpu.matmul %2, %3, %cst {dimension_numbers = #tpu.dot_dimension_numbers<[1], [0], [0], [1], [0, 0, 1, 1], [], []>} : vector<17x48xbf16>, vector<48x32xbf16>, vector<17x32xf32> -> vector<17x32xf32>
    %c0_4 = arith.constant 0 : index
    %c0_5 = arith.constant 0 : index
    %5 = vector.load %arg3[%c0_4, %c0_5] : memref<17x32xf32, #tpu.memory_space<vmem>>, vector<17x32xf32>
    %6 = arith.addf %4, %5 : vector<17x32xf32>
    %c0_6 = arith.constant 0 : index
    %c0_7 = arith.constant 0 : index
    %c0_8 = arith.constant 0 : index
    %7 = vector.load %arg4[%c0_6, %c0_7, %c0_8] : memref<1x17x32xf32, #tpu.memory_space<vmem>>, vector<1x17x32xf32>
    %8 = vector.shape_cast %7 : vector<1x17x32xf32> to vector<17x32xf32>
    %9 = vector.shape_cast %6 : vector<17x32xf32> to vector<1x17x32xf32>
    tpu.vector_store %arg4[%c0_6, %c0_7, %c0_8], %9 {strides = array<i32>} : memref<1x17x32xf32, #tpu.memory_space<vmem>>, vector<1x17x32xf32>,
    return
  }
  func.func @transform_0(%arg0: i32) -> (i32, i32, i32) {
    %c0_i32 = arith.constant 0 : i32
    %c0_i32_0 = arith.constant 0 : i32
    %c0_i32_1 = arith.constant 0 : i32
    return %arg0, %c0_i32, %c0_i32_0 : i32, i32, i32
  }
  func.func @transform_1(%arg0: i32) -> (i32, i32) {
    %c0_i32 = arith.constant 0 : i32
    %c0_i32_0 = arith.constant 0 : i32
    %c0_i32_1 = arith.constant 0 : i32
    return %c0_i32, %c0_i32_0 : i32, i32
  }
  func.func @transform_2(%arg0: i32) -> (i32, i32) {
    %c0_i32 = arith.constant 0 : i32
    %c0_i32_0 = arith.constant 0 : i32
    %c0_i32_1 = arith.constant 0 : i32
    return %c0_i32, %c0_i32_0 : i32, i32
  }
  func.func @transform_3(%arg0: i32) -> (i32, i32, i32) {
    %c0_i32 = arith.constant 0 : i32
    %c0_i32_0 = arith.constant 0 : i32
    %c0_i32_1 = arith.constant 0 : i32
    return %arg0, %c0_i32, %c0_i32_0 : i32, i32, i32
  }
}

module attributes {stable_mosaic.version = 11 : i64} {
  func.func @_ff_block_kernel(%arg0: i32, %arg1: memref<34x32xf32, #tpu.memory_space<vmem>>, %arg2: memref<1x32xf32, #tpu.memory_space<vmem>>, %arg3: memref<1x32xf32, #tpu.memory_space<vmem>>, %arg4: memref<32x64xbf16, #tpu.memory_space<vmem>>, %arg5: memref<1x64xf32, #tpu.memory_space<vmem>>, %arg6: memref<64x32xbf16, #tpu.memory_space<vmem>>, %arg7: memref<1x32xf32, #tpu.memory_space<vmem>>, %arg8: memref<34x32xf32, #tpu.memory_space<vmem>>) attributes {dimension_semantics = [#tpu.dimension_semantics<parallel>], iteration_bounds = array<i64: 1>, scalar_prefetch = 0 : i64, scratch_operands = 0 : i64, tpu.core_type = #tpu.core_type<tc>, window_params = [{transform_indices = @transform_0, window_bounds = array<i64: 34, 32>}, {pipeline_mode = #tpu.pipeline_mode<synchronous>, transform_indices = @transform_1, window_bounds = array<i64: 1, 32>}, {pipeline_mode = #tpu.pipeline_mode<synchronous>, transform_indices = @transform_2, window_bounds = array<i64: 1, 32>}, {pipeline_mode = #tpu.pipeline_mode<synchronous>, transform_indices = @transform_3, window_bounds = array<i64: 32, 64>}, {pipeline_mode = #tpu.pipeline_mode<synchronous>, transform_indices = @transform_4, window_bounds = array<i64: 1, 64>}, {pipeline_mode = #tpu.pipeline_mode<synchronous>, transform_indices = @transform_5, window_bounds = array<i64: 64, 32>}, {pipeline_mode = #tpu.pipeline_mode<synchronous>, transform_indices = @transform_6, window_bounds = array<i64: 1, 32>}, {transform_indices = @transform_7, window_bounds = array<i64: 34, 32>}]} {
    %c0 = arith.constant 0 : index
    %c0_0 = arith.constant 0 : index
    %0 = vector.load %arg1[%c0, %c0_0] : memref<34x32xf32, #tpu.memory_space<vmem>>, vector<34x32xf32>
    %c0_1 = arith.constant 0 : index
    %c0_2 = arith.constant 0 : index
    %1 = vector.load %arg2[%c0_1, %c0_2] : memref<1x32xf32, #tpu.memory_space<vmem>>, vector<1x32xf32>
    %c0_3 = arith.constant 0 : index
    %c0_4 = arith.constant 0 : index
    %2 = vector.load %arg3[%c0_3, %c0_4] : memref<1x32xf32, #tpu.memory_space<vmem>>, vector<1x32xf32>
    %cst = arith.constant dense<0.000000e+00> : vector<34xf32>
    %3 = vector.multi_reduction <add>, %0, %cst [1] : vector<34x32xf32> to vector<34xf32>
    %4 = vector.shape_cast %3 : vector<34xf32> to vector<34x1xf32>
    %cst_5 = arith.constant 3.200000e+01 : f32
    %5 = vector.broadcast %cst_5 : f32 to vector<34x1xf32>
    %6 = arith.divf %4, %5 : vector<34x1xf32>
    %7 = vector.broadcast %6 : vector<34x1xf32> to vector<34x32xf32>
    %8 = arith.subf %0, %7 : vector<34x32xf32>
    %9 = arith.mulf %8, %8 : vector<34x32xf32>
    %cst_6 = arith.constant dense<0.000000e+00> : vector<34xf32>
    %10 = vector.multi_reduction <add>, %9, %cst_6 [1] : vector<34x32xf32> to vector<34xf32>
    %11 = vector.shape_cast %10 : vector<34xf32> to vector<34x1xf32>
    %cst_7 = arith.constant 3.200000e+01 : f32
    %12 = vector.broadcast %cst_7 : f32 to vector<34x1xf32>
    %13 = arith.divf %11, %12 : vector<34x1xf32>
    %14 = vector.broadcast %6 : vector<34x1xf32> to vector<34x32xf32>
    %15 = arith.subf %0, %14 : vector<34x32xf32>
    %cst_8 = arith.constant 9.99999974E-6 : f32
    %16 = vector.broadcast %cst_8 : f32 to vector<34x1xf32>
    %17 = arith.addf %13, %16 : vector<34x1xf32>
    %18 = math.rsqrt %17 : vector<34x1xf32>
    %19 = vector.broadcast %18 : vector<34x1xf32> to vector<34x32xf32>
    %20 = arith.mulf %15, %19 : vector<34x32xf32>
    %21 = vector.broadcast %1 : vector<1x32xf32> to vector<34x32xf32>
    %22 = arith.mulf %20, %21 : vector<34x32xf32>
    %23 = vector.broadcast %2 : vector<1x32xf32> to vector<34x32xf32>
    %24 = arith.addf %22, %23 : vector<34x32xf32>
    %25 = arith.truncf %24 : vector<34x32xf32> to vector<34x32xbf16>
    %c0_9 = arith.constant 0 : index
    %c0_10 = arith.constant 0 : index
    %26 = vector.load %arg4[%c0_9, %c0_10] : memref<32x64xbf16, #tpu.memory_space<vmem>>, vector<32x64xbf16>
    %cst_11 = arith.constant dense<0.000000e+00> : vector<34x64xf32>
    %27 = tpu.matmul %25, %26, %cst_11 {dimension_numbers = #tpu.dot_dimension_numbers<[1], [0], [0], [1], [0, 0, 1, 1], [], []>} : vector<34x32xbf16>, vector<32x64xbf16>, vector<34x64xf32> -> vector<34x64xf32>
    %c0_12 = arith.constant 0 : index
    %c0_13 = arith.constant 0 : index
    %28 = vector.load %arg5[%c0_12, %c0_13] : memref<1x64xf32, #tpu.memory_space<vmem>>, vector<1x64xf32>
    %29 = vector.broadcast %28 : vector<1x64xf32> to vector<34x64xf32>
    %30 = arith.addf %27, %29 : vector<34x64xf32>
    %cst_14 = arith.constant 5.000000e-01 : f32
    %31 = vector.broadcast %cst_14 : f32 to vector<34x64xf32>
    %32 = arith.mulf %31, %30 : vector<34x64xf32>
    %cst_15 = arith.constant 0.707106769 : f32
    %33 = vector.broadcast %cst_15 : f32 to vector<34x64xf32>
    %34 = arith.mulf %30, %33 : vector<34x64xf32>
    %35 = math.absf %34 : vector<34x64xf32>
    %cst_16 = arith.constant 0.327591091 : f32
    %36 = vector.broadcast %cst_16 : f32 to vector<34x64xf32>
    %37 = arith.mulf %36, %35 : vector<34x64xf32>
    %cst_17 = arith.constant 1.000000e+00 : f32
    %38 = vector.broadcast %cst_17 : f32 to vector<34x64xf32>
    %39 = arith.addf %38, %37 : vector<34x64xf32>
    %cst_18 = arith.constant 1.000000e+00 : f32
    %40 = vector.broadcast %cst_18 : f32 to vector<34x64xf32>
    %41 = arith.divf %40, %39 : vector<34x64xf32>
    %cst_19 = arith.constant 1.06140542 : f32
    %42 = vector.broadcast %cst_19 : f32 to vector<34x64xf32>
    %43 = arith.mulf %42, %41 : vector<34x64xf32>
    %cst_20 = arith.constant -1.45315206 : f32
    %44 = vector.broadcast %cst_20 : f32 to vector<34x64xf32>
    %45 = arith.addf %43, %44 : vector<34x64xf32>
    %46 = arith.mulf %45, %41 : vector<34x64xf32>
    %cst_21 = arith.constant 1.42141378 : f32
    %47 = vector.broadcast %cst_21 : f32 to vector<34x64xf32>
    %48 = arith.addf %46, %47 : vector<34x64xf32>
    %49 = arith.mulf %48, %41 : vector<34x64xf32>
    %cst_22 = arith.constant -0.284496725 : f32
    %50 = vector.broadcast %cst_22 : f32 to vector<34x64xf32>
    %51 = arith.addf %49, %50 : vector<34x64xf32>
    %52 = arith.mulf %51, %41 : vector<34x64xf32>
    %cst_23 = arith.constant 0.254829586 : f32
    %53 = vector.broadcast %cst_23 : f32 to vector<34x64xf32>
    %54 = arith.addf %52, %53 : vector<34x64xf32>
    %55 = arith.mulf %54, %41 : vector<34x64xf32>
    %56 = arith.mulf %35, %35 : vector<34x64xf32>
    %cst_24 = arith.constant 0.000000e+00 : f32
    %57 = vector.broadcast %cst_24 : f32 to vector<34x64xf32>
    %58 = arith.subf %57, %56 : vector<34x64xf32>
    %59 = math.exp %58 : vector<34x64xf32>
    %60 = arith.mulf %55, %59 : vector<34x64xf32>
    %cst_25 = arith.constant 1.000000e+00 : f32
    %61 = vector.broadcast %cst_25 : f32 to vector<34x64xf32>
    %62 = arith.subf %61, %60 : vector<34x64xf32>
    %cst_26 = arith.constant 0.000000e+00 : f32
    %63 = vector.broadcast %cst_26 : f32 to vector<34x64xf32>
    %64 = arith.cmpf oge, %34, %63 : vector<34x64xf32>
    %cst_27 = arith.constant 0.000000e+00 : f32
    %65 = vector.broadcast %cst_27 : f32 to vector<34x64xf32>
    %66 = arith.subf %65, %62 : vector<34x64xf32>
    %67 = arith.select %64, %62, %66 : vector<34x64xi1>, vector<34x64xf32>
    %cst_28 = arith.constant 1.000000e+00 : f32
    %68 = vector.broadcast %cst_28 : f32 to vector<34x64xf32>
    %69 = arith.addf %68, %67 : vector<34x64xf32>
    %70 = arith.mulf %32, %69 : vector<34x64xf32>
    %71 = arith.truncf %70 : vector<34x64xf32> to vector<34x64xbf16>
    %c0_29 = arith.constant 0 : index
    %c0_30 = arith.constant 0 : index
    %72 = vector.load %arg6[%c0_29, %c0_30] : memref<64x32xbf16, #tpu.memory_space<vmem>>, vector<64x32xbf16>
    %cst_31 = arith.constant dense<0.000000e+00> : vector<34x32xf32>
    %73 = tpu.matmul %71, %72, %cst_31 {dimension_numbers = #tpu.dot_dimension_numbers<[1], [0], [0], [1], [0, 0, 1, 1], [], []>} : vector<34x64xbf16>, vector<64x32xbf16>, vector<34x32xf32> -> vector<34x32xf32>
    %c0_32 = arith.constant 0 : index
    %c0_33 = arith.constant 0 : index
    %74 = vector.load %arg7[%c0_32, %c0_33] : memref<1x32xf32, #tpu.memory_space<vmem>>, vector<1x32xf32>
    %75 = vector.broadcast %74 : vector<1x32xf32> to vector<34x32xf32>
    %76 = arith.addf %73, %75 : vector<34x32xf32>
    %77 = arith.addf %0, %76 : vector<34x32xf32>
    %c0_34 = arith.constant 0 : index
    %c0_35 = arith.constant 0 : index
    %78 = vector.load %arg8[%c0_34, %c0_35] : memref<34x32xf32, #tpu.memory_space<vmem>>, vector<34x32xf32>
    tpu.vector_store %arg8[%c0_34, %c0_35], %77 {strides = array<i32>} : memref<34x32xf32, #tpu.memory_space<vmem>>, vector<34x32xf32>,
    return
  }
  func.func @transform_0(%arg0: i32) -> (i32, i32) {
    %c0_i32 = arith.constant 0 : i32
    %c0_i32_0 = arith.constant 0 : i32
    return %arg0, %c0_i32 : i32, i32
  }
  func.func @transform_1(%arg0: i32) -> (i32, i32) {
    %c0_i32 = arith.constant 0 : i32
    %c0_i32_0 = arith.constant 0 : i32
    %c0_i32_1 = arith.constant 0 : i32
    return %c0_i32, %c0_i32_0 : i32, i32
  }
  func.func @transform_2(%arg0: i32) -> (i32, i32) {
    %c0_i32 = arith.constant 0 : i32
    %c0_i32_0 = arith.constant 0 : i32
    %c0_i32_1 = arith.constant 0 : i32
    return %c0_i32, %c0_i32_0 : i32, i32
  }
  func.func @transform_3(%arg0: i32) -> (i32, i32) {
    %c0_i32 = arith.constant 0 : i32
    %c0_i32_0 = arith.constant 0 : i32
    %c0_i32_1 = arith.constant 0 : i32
    return %c0_i32, %c0_i32_0 : i32, i32
  }
  func.func @transform_4(%arg0: i32) -> (i32, i32) {
    %c0_i32 = arith.constant 0 : i32
    %c0_i32_0 = arith.constant 0 : i32
    %c0_i32_1 = arith.constant 0 : i32
    return %c0_i32, %c0_i32_0 : i32, i32
  }
  func.func @transform_5(%arg0: i32) -> (i32, i32) {
    %c0_i32 = arith.constant 0 : i32
    %c0_i32_0 = arith.constant 0 : i32
    %c0_i32_1 = arith.constant 0 : i32
    return %c0_i32, %c0_i32_0 : i32, i32
  }
  func.func @transform_6(%arg0: i32) -> (i32, i32) {
    %c0_i32 = arith.constant 0 : i32
    %c0_i32_0 = arith.constant 0 : i32
    %c0_i32_1 = arith.constant 0 : i32
    return %c0_i32, %c0_i32_0 : i32, i32
  }
  func.func @transform_7(%arg0: i32) -> (i32, i32) {
    %c0_i32 = arith.constant 0 : i32
    %c0_i32_0 = arith.constant 0 : i32
    return %arg0, %c0_i32 : i32, i32
  }
}

module attributes {stable_mosaic.version = 11 : i64} {
  func.func @_attn_block_kernel(%arg0: i32, %arg1: memref<1x17x32xf32, #tpu.memory_space<vmem>>, %arg2: memref<1x32xf32, #tpu.memory_space<vmem>>, %arg3: memref<1x32xf32, #tpu.memory_space<vmem>>, %arg4: memref<32x96xbf16, #tpu.memory_space<vmem>>, %arg5: memref<32x32xbf16, #tpu.memory_space<vmem>>, %arg6: memref<1x32xf32, #tpu.memory_space<vmem>>, %arg7: memref<1x17x32xf32, #tpu.memory_space<vmem>>) attributes {dimension_semantics = [#tpu.dimension_semantics<parallel>], iteration_bounds = array<i64: 2>, scalar_prefetch = 0 : i64, scratch_operands = 0 : i64, tpu.core_type = #tpu.core_type<tc>, window_params = [{transform_indices = @transform_0, window_bounds = array<i64: 1, 17, 32>}, {pipeline_mode = #tpu.pipeline_mode<synchronous>, transform_indices = @transform_1, window_bounds = array<i64: 1, 32>}, {pipeline_mode = #tpu.pipeline_mode<synchronous>, transform_indices = @transform_2, window_bounds = array<i64: 1, 32>}, {pipeline_mode = #tpu.pipeline_mode<synchronous>, transform_indices = @transform_3, window_bounds = array<i64: 32, 96>}, {pipeline_mode = #tpu.pipeline_mode<synchronous>, transform_indices = @transform_4, window_bounds = array<i64: 32, 32>}, {pipeline_mode = #tpu.pipeline_mode<synchronous>, transform_indices = @transform_5, window_bounds = array<i64: 1, 32>}, {transform_indices = @transform_6, window_bounds = array<i64: 1, 17, 32>}]} {
    %c0 = arith.constant 0 : index
    %c0_0 = arith.constant 0 : index
    %c0_1 = arith.constant 0 : index
    %0 = vector.load %arg1[%c0, %c0_0, %c0_1] : memref<1x17x32xf32, #tpu.memory_space<vmem>>, vector<1x17x32xf32>
    %1 = vector.shape_cast %0 : vector<1x17x32xf32> to vector<17x32xf32>
    %c0_2 = arith.constant 0 : index
    %c0_3 = arith.constant 0 : index
    %2 = vector.load %arg2[%c0_2, %c0_3] : memref<1x32xf32, #tpu.memory_space<vmem>>, vector<1x32xf32>
    %c0_4 = arith.constant 0 : index
    %c0_5 = arith.constant 0 : index
    %3 = vector.load %arg3[%c0_4, %c0_5] : memref<1x32xf32, #tpu.memory_space<vmem>>, vector<1x32xf32>
    %cst = arith.constant dense<0.000000e+00> : vector<17xf32>
    %4 = vector.multi_reduction <add>, %1, %cst [1] : vector<17x32xf32> to vector<17xf32>
    %5 = vector.shape_cast %4 : vector<17xf32> to vector<17x1xf32>
    %cst_6 = arith.constant 3.200000e+01 : f32
    %6 = vector.broadcast %cst_6 : f32 to vector<17x1xf32>
    %7 = arith.divf %5, %6 : vector<17x1xf32>
    %8 = vector.broadcast %7 : vector<17x1xf32> to vector<17x32xf32>
    %9 = arith.subf %1, %8 : vector<17x32xf32>
    %10 = arith.mulf %9, %9 : vector<17x32xf32>
    %cst_7 = arith.constant dense<0.000000e+00> : vector<17xf32>
    %11 = vector.multi_reduction <add>, %10, %cst_7 [1] : vector<17x32xf32> to vector<17xf32>
    %12 = vector.shape_cast %11 : vector<17xf32> to vector<17x1xf32>
    %cst_8 = arith.constant 3.200000e+01 : f32
    %13 = vector.broadcast %cst_8 : f32 to vector<17x1xf32>
    %14 = arith.divf %12, %13 : vector<17x1xf32>
    %15 = vector.broadcast %7 : vector<17x1xf32> to vector<17x32xf32>
    %16 = arith.subf %1, %15 : vector<17x32xf32>
    %cst_9 = arith.constant 9.99999974E-6 : f32
    %17 = vector.broadcast %cst_9 : f32 to vector<17x1xf32>
    %18 = arith.addf %14, %17 : vector<17x1xf32>
    %19 = math.rsqrt %18 : vector<17x1xf32>
    %20 = vector.broadcast %19 : vector<17x1xf32> to vector<17x32xf32>
    %21 = arith.mulf %16, %20 : vector<17x32xf32>
    %22 = vector.broadcast %2 : vector<1x32xf32> to vector<17x32xf32>
    %23 = arith.mulf %21, %22 : vector<17x32xf32>
    %24 = vector.broadcast %3 : vector<1x32xf32> to vector<17x32xf32>
    %25 = arith.addf %23, %24 : vector<17x32xf32>
    %26 = arith.truncf %25 : vector<17x32xf32> to vector<17x32xbf16>
    %c0_10 = arith.constant 0 : index
    %c0_11 = arith.constant 0 : index
    %27 = vector.load %arg4[%c0_10, %c0_11] : memref<32x96xbf16, #tpu.memory_space<vmem>>, vector<32x96xbf16>
    %cst_12 = arith.constant dense<0.000000e+00> : vector<17x96xf32>
    %28 = tpu.matmul %26, %27, %cst_12 {dimension_numbers = #tpu.dot_dimension_numbers<[1], [0], [0], [1], [0, 0, 1, 1], [], []>} : vector<17x32xbf16>, vector<32x96xbf16>, vector<17x96xf32> -> vector<17x96xf32>
    %29 = vector.extract_strided_slice %28 {offsets = [0, 0], sizes = [17, 8], strides = [1, 1]} : vector<17x96xf32> to vector<17x8xf32>
    %30 = arith.truncf %29 : vector<17x8xf32> to vector<17x8xbf16>
    %31 = vector.extract_strided_slice %28 {offsets = [0, 32], sizes = [17, 8], strides = [1, 1]} : vector<17x96xf32> to vector<17x8xf32>
    %32 = arith.truncf %31 : vector<17x8xf32> to vector<17x8xbf16>
    %33 = vector.extract_strided_slice %28 {offsets = [0, 64], sizes = [17, 8], strides = [1, 1]} : vector<17x96xf32> to vector<17x8xf32>
    %cst_13 = arith.constant dense<0.000000e+00> : vector<17x17xf32>
    %34 = tpu.matmul %30, %32, %cst_13 {dimension_numbers = #tpu.dot_dimension_numbers<[1], [1], [0], [0], [0, 0, 1, 0], [], []>} : vector<17x8xbf16>, vector<17x8xbf16>, vector<17x17xf32> -> vector<17x17xf32>
    %cst_14 = arith.constant 0.353553385 : f32
    %35 = vector.broadcast %cst_14 : f32 to vector<17x17xf32>
    %36 = arith.mulf %34, %35 : vector<17x17xf32>
    %37 = vector.extract_strided_slice %28 {offsets = [0, 8], sizes = [17, 8], strides = [1, 1]} : vector<17x96xf32> to vector<17x8xf32>
    %38 = arith.truncf %37 : vector<17x8xf32> to vector<17x8xbf16>
    %39 = vector.extract_strided_slice %28 {offsets = [0, 40], sizes = [17, 8], strides = [1, 1]} : vector<17x96xf32> to vector<17x8xf32>
    %40 = arith.truncf %39 : vector<17x8xf32> to vector<17x8xbf16>
    %41 = vector.extract_strided_slice %28 {offsets = [0, 72], sizes = [17, 8], strides = [1, 1]} : vector<17x96xf32> to vector<17x8xf32>
    %cst_15 = arith.constant dense<0.000000e+00> : vector<17x17xf32>
    %42 = tpu.matmul %38, %40, %cst_15 {dimension_numbers = #tpu.dot_dimension_numbers<[1], [1], [0], [0], [0, 0, 1, 0], [], []>} : vector<17x8xbf16>, vector<17x8xbf16>, vector<17x17xf32> -> vector<17x17xf32>
    %cst_16 = arith.constant 0.353553385 : f32
    %43 = vector.broadcast %cst_16 : f32 to vector<17x17xf32>
    %44 = arith.mulf %42, %43 : vector<17x17xf32>
    %45 = vector.extract_strided_slice %28 {offsets = [0, 16], sizes = [17, 8], strides = [1, 1]} : vector<17x96xf32> to vector<17x8xf32>
    %46 = arith.truncf %45 : vector<17x8xf32> to vector<17x8xbf16>
    %47 = vector.extract_strided_slice %28 {offsets = [0, 48], sizes = [17, 8], strides = [1, 1]} : vector<17x96xf32> to vector<17x8xf32>
    %48 = arith.truncf %47 : vector<17x8xf32> to vector<17x8xbf16>
    %49 = vector.extract_strided_slice %28 {offsets = [0, 80], sizes = [17, 8], strides = [1, 1]} : vector<17x96xf32> to vector<17x8xf32>
    %cst_17 = arith.constant dense<0.000000e+00> : vector<17x17xf32>
    %50 = tpu.matmul %46, %48, %cst_17 {dimension_numbers = #tpu.dot_dimension_numbers<[1], [1], [0], [0], [0, 0, 1, 0], [], []>} : vector<17x8xbf16>, vector<17x8xbf16>, vector<17x17xf32> -> vector<17x17xf32>
    %cst_18 = arith.constant 0.353553385 : f32
    %51 = vector.broadcast %cst_18 : f32 to vector<17x17xf32>
    %52 = arith.mulf %50, %51 : vector<17x17xf32>
    %53 = vector.extract_strided_slice %28 {offsets = [0, 24], sizes = [17, 8], strides = [1, 1]} : vector<17x96xf32> to vector<17x8xf32>
    %54 = arith.truncf %53 : vector<17x8xf32> to vector<17x8xbf16>
    %55 = vector.extract_strided_slice %28 {offsets = [0, 56], sizes = [17, 8], strides = [1, 1]} : vector<17x96xf32> to vector<17x8xf32>
    %56 = arith.truncf %55 : vector<17x8xf32> to vector<17x8xbf16>
    %57 = vector.extract_strided_slice %28 {offsets = [0, 88], sizes = [17, 8], strides = [1, 1]} : vector<17x96xf32> to vector<17x8xf32>
    %cst_19 = arith.constant dense<0.000000e+00> : vector<17x17xf32>
    %58 = tpu.matmul %54, %56, %cst_19 {dimension_numbers = #tpu.dot_dimension_numbers<[1], [1], [0], [0], [0, 0, 1, 0], [], []>} : vector<17x8xbf16>, vector<17x8xbf16>, vector<17x17xf32> -> vector<17x17xf32>
    %cst_20 = arith.constant 0.353553385 : f32
    %59 = vector.broadcast %cst_20 : f32 to vector<17x17xf32>
    %60 = arith.mulf %58, %59 : vector<17x17xf32>
    %61 = arith.maximumf %36, %44 : vector<17x17xf32>
    %62 = arith.maximumf %61, %52 : vector<17x17xf32>
    %63 = arith.maximumf %62, %60 : vector<17x17xf32>
    %64 = arith.subf %36, %63 : vector<17x17xf32>
    %65 = math.exp %64 : vector<17x17xf32>
    %66 = arith.subf %44, %63 : vector<17x17xf32>
    %67 = math.exp %66 : vector<17x17xf32>
    %68 = arith.subf %52, %63 : vector<17x17xf32>
    %69 = math.exp %68 : vector<17x17xf32>
    %70 = arith.subf %60, %63 : vector<17x17xf32>
    %71 = math.exp %70 : vector<17x17xf32>
    %72 = arith.addf %65, %67 : vector<17x17xf32>
    %73 = arith.addf %72, %69 : vector<17x17xf32>
    %74 = arith.addf %73, %71 : vector<17x17xf32>
    %75 = tpu.reciprocal %74 {approx = true} : vector<17x17xf32> -> vector<17x17xf32>
    %76 = arith.mulf %65, %75 : vector<17x17xf32>
    %77 = arith.truncf %76 : vector<17x17xf32> to vector<17x17xbf16>
    %78 = arith.truncf %33 : vector<17x8xf32> to vector<17x8xbf16>
    %cst_21 = arith.constant dense<0.000000e+00> : vector<17x8xf32>
    %79 = tpu.matmul %77, %78, %cst_21 {dimension_numbers = #tpu.dot_dimension_numbers<[1], [0], [0], [1], [0, 0, 1, 1], [], []>} : vector<17x17xbf16>, vector<17x8xbf16>, vector<17x8xf32> -> vector<17x8xf32>
    %80 = arith.mulf %67, %75 : vector<17x17xf32>
    %81 = arith.truncf %80 : vector<17x17xf32> to vector<17x17xbf16>
    %82 = arith.truncf %41 : vector<17x8xf32> to vector<17x8xbf16>
    %cst_22 = arith.constant dense<0.000000e+00> : vector<17x8xf32>
    %83 = tpu.matmul %81, %82, %cst_22 {dimension_numbers = #tpu.dot_dimension_numbers<[1], [0], [0], [1], [0, 0, 1, 1], [], []>} : vector<17x17xbf16>, vector<17x8xbf16>, vector<17x8xf32> -> vector<17x8xf32>
    %84 = arith.mulf %69, %75 : vector<17x17xf32>
    %85 = arith.truncf %84 : vector<17x17xf32> to vector<17x17xbf16>
    %86 = arith.truncf %49 : vector<17x8xf32> to vector<17x8xbf16>
    %cst_23 = arith.constant dense<0.000000e+00> : vector<17x8xf32>
    %87 = tpu.matmul %85, %86, %cst_23 {dimension_numbers = #tpu.dot_dimension_numbers<[1], [0], [0], [1], [0, 0, 1, 1], [], []>} : vector<17x17xbf16>, vector<17x8xbf16>, vector<17x8xf32> -> vector<17x8xf32>
    %88 = arith.mulf %71, %75 : vector<17x17xf32>
    %89 = arith.truncf %88 : vector<17x17xf32> to vector<17x17xbf16>
    %90 = arith.truncf %57 : vector<17x8xf32> to vector<17x8xbf16>
    %cst_24 = arith.constant dense<0.000000e+00> : vector<17x8xf32>
    %91 = tpu.matmul %89, %90, %cst_24 {dimension_numbers = #tpu.dot_dimension_numbers<[1], [0], [0], [1], [0, 0, 1, 1], [], []>} : vector<17x17xbf16>, vector<17x8xbf16>, vector<17x8xf32> -> vector<17x8xf32>
    %92 = tpu.concatenate %79, %83, %87, %91 in 1 : vector<17x8xf32>, vector<17x8xf32>, vector<17x8xf32>, vector<17x8xf32> -> vector<17x32xf32>
    %93 = arith.truncf %92 : vector<17x32xf32> to vector<17x32xbf16>
    %c0_25 = arith.constant 0 : index
    %c0_26 = arith.constant 0 : index
    %94 = vector.load %arg5[%c0_25, %c0_26] : memref<32x32xbf16, #tpu.memory_space<vmem>>, vector<32x32xbf16>
    %cst_27 = arith.constant dense<0.000000e+00> : vector<17x32xf32>
    %95 = tpu.matmul %93, %94, %cst_27 {dimension_numbers = #tpu.dot_dimension_numbers<[1], [0], [0], [1], [0, 0, 1, 1], [], []>} : vector<17x32xbf16>, vector<32x32xbf16>, vector<17x32xf32> -> vector<17x32xf32>
    %96 = arith.addf %1, %95 : vector<17x32xf32>
    %c0_28 = arith.constant 0 : index
    %c0_29 = arith.constant 0 : index
    %97 = vector.load %arg6[%c0_28, %c0_29] : memref<1x32xf32, #tpu.memory_space<vmem>>, vector<1x32xf32>
    %98 = vector.broadcast %97 : vector<1x32xf32> to vector<17x32xf32>
    %99 = arith.addf %96, %98 : vector<17x32xf32>
    %c0_30 = arith.constant 0 : index
    %c0_31 = arith.constant 0 : index
    %c0_32 = arith.constant 0 : index
    %100 = vector.load %arg7[%c0_30, %c0_31, %c0_32] : memref<1x17x32xf32, #tpu.memory_space<vmem>>, vector<1x17x32xf32>
    %101 = vector.shape_cast %100 : vector<1x17x32xf32> to vector<17x32xf32>
    %102 = vector.shape_cast %99 : vector<17x32xf32> to vector<1x17x32xf32>
    tpu.vector_store %arg7[%c0_30, %c0_31, %c0_32], %102 {strides = array<i32>} : memref<1x17x32xf32, #tpu.memory_space<vmem>>, vector<1x17x32xf32>,
    return
  }
  func.func @transform_0(%arg0: i32) -> (i32, i32, i32) {
    %c0_i32 = arith.constant 0 : i32
    %c0_i32_0 = arith.constant 0 : i32
    %c0_i32_1 = arith.constant 0 : i32
    return %arg0, %c0_i32, %c0_i32_0 : i32, i32, i32
  }
  func.func @transform_1(%arg0: i32) -> (i32, i32) {
    %c0_i32 = arith.constant 0 : i32
    %c0_i32_0 = arith.constant 0 : i32
    %c0_i32_1 = arith.constant 0 : i32
    return %c0_i32, %c0_i32_0 : i32, i32
  }
  func.func @transform_2(%arg0: i32) -> (i32, i32) {
    %c0_i32 = arith.constant 0 : i32
    %c0_i32_0 = arith.constant 0 : i32
    %c0_i32_1 = arith.constant 0 : i32
    return %c0_i32, %c0_i32_0 : i32, i32
  }
  func.func @transform_3(%arg0: i32) -> (i32, i32) {
    %c0_i32 = arith.constant 0 : i32
    %c0_i32_0 = arith.constant 0 : i32
    %c0_i32_1 = arith.constant 0 : i32
    return %c0_i32, %c0_i32_0 : i32, i32
  }
  func.func @transform_4(%arg0: i32) -> (i32, i32) {
    %c0_i32 = arith.constant 0 : i32
    %c0_i32_0 = arith.constant 0 : i32
    %c0_i32_1 = arith.constant 0 : i32
    return %c0_i32, %c0_i32_0 : i32, i32
  }
  func.func @transform_5(%arg0: i32) -> (i32, i32) {
    %c0_i32 = arith.constant 0 : i32
    %c0_i32_0 = arith.constant 0 : i32
    %c0_i32_1 = arith.constant 0 : i32
    return %c0_i32, %c0_i32_0 : i32, i32
  }
  func.func @transform_6(%arg0: i32) -> (i32, i32, i32) {
    %c0_i32 = arith.constant 0 : i32
    %c0_i32_0 = arith.constant 0 : i32
    %c0_i32_1 = arith.constant 0 : i32
    return %arg0, %c0_i32, %c0_i32_0 : i32, i32, i32
  }
}

module attributes {stable_mosaic.version = 11 : i64} {
  func.func @_head_kernel(%arg0: i32, %arg1: memref<2x32xf32, #tpu.memory_space<vmem>>, %arg2: memref<1x32xf32, #tpu.memory_space<vmem>>, %arg3: memref<1x32xf32, #tpu.memory_space<vmem>>, %arg4: memref<32x10xbf16, #tpu.memory_space<vmem>>, %arg5: memref<1x10xf32, #tpu.memory_space<vmem>>, %arg6: memref<2x10xf32, #tpu.memory_space<vmem>>) attributes {dimension_semantics = [#tpu.dimension_semantics<arbitrary>], iteration_bounds = array<i64: 1>, scalar_prefetch = 0 : i64, scratch_operands = 0 : i64, tpu.core_type = #tpu.core_type<tc>, window_params = [{pipeline_mode = #tpu.pipeline_mode<synchronous>, transform_indices = @transform_0, window_bounds = array<i64: 2, 32>}, {pipeline_mode = #tpu.pipeline_mode<synchronous>, transform_indices = @transform_1, window_bounds = array<i64: 1, 32>}, {pipeline_mode = #tpu.pipeline_mode<synchronous>, transform_indices = @transform_2, window_bounds = array<i64: 1, 32>}, {pipeline_mode = #tpu.pipeline_mode<synchronous>, transform_indices = @transform_3, window_bounds = array<i64: 32, 10>}, {pipeline_mode = #tpu.pipeline_mode<synchronous>, transform_indices = @transform_4, window_bounds = array<i64: 1, 10>}, {pipeline_mode = #tpu.pipeline_mode<synchronous>, transform_indices = @transform_5, window_bounds = array<i64: 2, 10>}]} {
    %c0 = arith.constant 0 : index
    %c0_0 = arith.constant 0 : index
    %0 = vector.load %arg1[%c0, %c0_0] : memref<2x32xf32, #tpu.memory_space<vmem>>, vector<2x32xf32>
    %c0_1 = arith.constant 0 : index
    %c0_2 = arith.constant 0 : index
    %1 = vector.load %arg2[%c0_1, %c0_2] : memref<1x32xf32, #tpu.memory_space<vmem>>, vector<1x32xf32>
    %c0_3 = arith.constant 0 : index
    %c0_4 = arith.constant 0 : index
    %2 = vector.load %arg3[%c0_3, %c0_4] : memref<1x32xf32, #tpu.memory_space<vmem>>, vector<1x32xf32>
    %cst = arith.constant dense<0.000000e+00> : vector<2xf32>
    %3 = vector.multi_reduction <add>, %0, %cst [1] : vector<2x32xf32> to vector<2xf32>
    %4 = vector.shape_cast %3 : vector<2xf32> to vector<2x1xf32>
    %cst_5 = arith.constant 3.200000e+01 : f32
    %5 = vector.broadcast %cst_5 : f32 to vector<2x1xf32>
    %6 = arith.divf %4, %5 : vector<2x1xf32>
    %7 = vector.broadcast %6 : vector<2x1xf32> to vector<2x32xf32>
    %8 = arith.subf %0, %7 : vector<2x32xf32>
    %9 = arith.mulf %8, %8 : vector<2x32xf32>
    %cst_6 = arith.constant dense<0.000000e+00> : vector<2xf32>
    %10 = vector.multi_reduction <add>, %9, %cst_6 [1] : vector<2x32xf32> to vector<2xf32>
    %11 = vector.shape_cast %10 : vector<2xf32> to vector<2x1xf32>
    %cst_7 = arith.constant 3.200000e+01 : f32
    %12 = vector.broadcast %cst_7 : f32 to vector<2x1xf32>
    %13 = arith.divf %11, %12 : vector<2x1xf32>
    %14 = vector.broadcast %6 : vector<2x1xf32> to vector<2x32xf32>
    %15 = arith.subf %0, %14 : vector<2x32xf32>
    %cst_8 = arith.constant 9.99999974E-6 : f32
    %16 = vector.broadcast %cst_8 : f32 to vector<2x1xf32>
    %17 = arith.addf %13, %16 : vector<2x1xf32>
    %18 = math.rsqrt %17 : vector<2x1xf32>
    %19 = vector.broadcast %18 : vector<2x1xf32> to vector<2x32xf32>
    %20 = arith.mulf %15, %19 : vector<2x32xf32>
    %21 = vector.broadcast %1 : vector<1x32xf32> to vector<2x32xf32>
    %22 = arith.mulf %20, %21 : vector<2x32xf32>
    %23 = vector.broadcast %2 : vector<1x32xf32> to vector<2x32xf32>
    %24 = arith.addf %22, %23 : vector<2x32xf32>
    %25 = arith.truncf %24 : vector<2x32xf32> to vector<2x32xbf16>
    %c0_9 = arith.constant 0 : index
    %c0_10 = arith.constant 0 : index
    %26 = vector.load %arg4[%c0_9, %c0_10] : memref<32x10xbf16, #tpu.memory_space<vmem>>, vector<32x10xbf16>
    %cst_11 = arith.constant dense<0.000000e+00> : vector<2x10xf32>
    %27 = tpu.matmul %25, %26, %cst_11 {dimension_numbers = #tpu.dot_dimension_numbers<[1], [0], [0], [1], [0, 0, 1, 1], [], []>} : vector<2x32xbf16>, vector<32x10xbf16>, vector<2x10xf32> -> vector<2x10xf32>
    %c0_12 = arith.constant 0 : index
    %c0_13 = arith.constant 0 : index
    %28 = vector.load %arg5[%c0_12, %c0_13] : memref<1x10xf32, #tpu.memory_space<vmem>>, vector<1x10xf32>
    %29 = vector.broadcast %28 : vector<1x10xf32> to vector<2x10xf32>
    %30 = arith.addf %27, %29 : vector<2x10xf32>
    %c0_14 = arith.constant 0 : index
    %c0_15 = arith.constant 0 : index
    %31 = vector.load %arg6[%c0_14, %c0_15] : memref<2x10xf32, #tpu.memory_space<vmem>>, vector<2x10xf32>
    tpu.vector_store %arg6[%c0_14, %c0_15], %30 {strides = array<i32>} : memref<2x10xf32, #tpu.memory_space<vmem>>, vector<2x10xf32>,
    return
  }
  func.func @transform_0(%arg0: i32) -> (i32, i32) {
    %c0_i32 = arith.constant 0 : i32
    %c0_i32_0 = arith.constant 0 : i32
    %c0_i32_1 = arith.constant 0 : i32
    return %c0_i32, %c0_i32_0 : i32, i32
  }
  func.func @transform_1(%arg0: i32) -> (i32, i32) {
    %c0_i32 = arith.constant 0 : i32
    %c0_i32_0 = arith.constant 0 : i32
    %c0_i32_1 = arith.constant 0 : i32
    return %c0_i32, %c0_i32_0 : i32, i32
  }
  func.func @transform_2(%arg0: i32) -> (i32, i32) {
    %c0_i32 = arith.constant 0 : i32
    %c0_i32_0 = arith.constant 0 : i32
    %c0_i32_1 = arith.constant 0 : i32
    return %c0_i32, %c0_i32_0 : i32, i32
  }
  func.func @transform_3(%arg0: i32) -> (i32, i32) {
    %c0_i32 = arith.constant 0 : i32
    %c0_i32_0 = arith.constant 0 : i32
    %c0_i32_1 = arith.constant 0 : i32
    return %c0_i32, %c0_i32_0 : i32, i32
  }
  func.func @transform_4(%arg0: i32) -> (i32, i32) {
    %c0_i32 = arith.constant 0 : i32
    %c0_i32_0 = arith.constant 0 : i32
    %c0_i32_1 = arith.constant 0 : i32
    return %c0_i32, %c0_i32_0 : i32, i32
  }
  func.func @transform_5(%arg0: i32) -> (i32, i32) {
    %c0_i32 = arith.constant 0 : i32
    %c0_i32_0 = arith.constant 0 : i32
    %c0_i32_1 = arith.constant 0 : i32
    return %c0_i32, %c0_i32_0 : i32, i32
  }
}

</mosaic_0001>

<bundles_post_ra>
// kernel: _lambda_.6
= control target key start
LH: loop header
LB: loop body
LE: loop exit
PB: predicated region body
PF: predicated region fallthrough
CT: control target
= control target key end

     0   :  { %s388_s12 = smov 0   ;;  %s423_s0 = inlined_call_operand.vmem [shape: f32[2,17,48], index: 0, kind: input, shape index: {}]   ;;  %s424_s1 = inlined_call_operand.vmem [shape: bf16[48,32], index: 1, kind: input, shape index: {}]   ;;  %s425_s2 = inlined_call_operand.vmem [shape: f32[17,32], index: 2, kind: input, shape index: {}]   ;;  %s426_s3 = inlined_call_operand.vmem [shape: f32[2,17,32], index: 3, kind: output, shape index: {}]  }
   0x1 LB: > { %s319_s13 = sadd.s32 4294967295, %s366_s12   ;;  %p323_p0 = scmp.ge.s32.totalorder %s366_s12, 1  ;;  %s366_s12 = sphi %s388_s12, %s13_s12  }
   0x2   : > { %p137_p1 = scmp.lt.s32.totalorder %s366_s12, 3 }
   0x4   : > { %p138_p2 = pnand %p323_p0, %p137_p1 }
   0x5   : > { %v357_v0 = vld [vmem:[%s424_s1] sm:$0xff] (!%p138_p2)   ;;  %p161_p3 = scmp.lt.s32.totalorder (!%p138_p2), %s319_s13, 1  ;;  %v358_v1 = vld [vmem:[%s424_s1 + $0x8] sm:$0xff] (!%p138_p2)   ;;  %v359_v2 = vld [vmem:[%s424_s1 + $0x10] sm:$0xff] (!%p138_p2)   ;;  %vm204_vm0 = vcmask (!%p138_p2), 392192   ;;  %vm262_vm1 = vcmask (!%p138_p2), 253952  }
   0x6   : > { %141 = sbr.rel (%p138_p2) target bundleno = 239 (0xef), region = 32  ;;  %338 = vmatprep.subr.bf16.mxu0 (!%p138_p2), %v357_v0  ;;  %v185_v8 = vld [vmem:[%s425_s2 + $0x10] sm:$0x1] (!%p138_p2)  ;;  %v183_v9 = vld [vmem:[%s425_s2] sm:$0xff] (!%p138_p2)  ;;  %vm259_vm2 = vcmask (!%p138_p2), 261120   ;;  %v184_v13 = vld [vmem:[%s425_s2 + $0x8] sm:$0xff] (!%p138_p2) }
   0x7   : > { %339 = vmatpush3.bf16.msra.mxu0 (!%p138_p2), %v357_v0 }
   0x8   : > { %340 = vmatprep.subr.bf16.mxu0 (!%p138_p2), %v358_v1 }
   0xb   : > { %341 = vmatpush3.bf16.msra.mxu0 (!%p138_p2), %v358_v1 }
   0xc   : > { %342 = vmatprep.subr.bf16.mxu0 (!%p138_p2), %v359_v2 }
   0xd   : > { %s428_s13 = smov (!%p161_p3, %s319_s13), 1 }
   0xe   : > { %s348_s20 = smul.u32 24, %s428_s13 }
   0xf   : > { %343 = vmatpush3.bf16.msra.mxu0 %v359_v2 }
  0x10   : > { %s165_s23 = scalar_lea.vmem %s423_s0, %s348_s20  ;;  %s170_s30 = scalar_lea.vmem %s426_s3, %s348_s20 }
  0x11   : > { %v172_v3 = vld [vmem:[%s165_s23] sm:$0xff]  ;;  %v173_v4 = vld [vmem:[%s165_s23 + $0x8] sm:$0xff]  ;;  %v174_v5 = vld [vmem:[%s165_s23 + $0x10] sm:$0x1] }
  0x12   : > { %v175_v6 = vpack.c.bf16 %v173_v4, %v172_v3  ;;  %v176_v7 = vpack.c.bf16 %v174_v5, %v174_v5 }
  0x14   : > { %344 = vmatprep.mubr.msk.bf16.mxu0 %vm204_vm0, %v175_v6 }
  0x15   : > { %345 = vmatmul.mubr.msk.bf16.vlgmr.msra.gmra.mrb[0].mxu0 %vm204_vm0, %v176_v7 }
  0xe8   : > { %v346_v10 = vpop.f32.mrb[0].mxu0 }
  0xe9   : > { %v254_v11 = vadd.f32 %v346_v10, %v185_v8  ;;  %v245_v12 = vpop.f32.mrb[1].mxu0 }
  0xea   : > { %v246_v14 = vadd.f32 %v245_v12, %v183_v9  ;;  %v347_v15 = vpop.f32.mrb[2].mxu0 }
  0xeb   : > { %263 = vst.msk [vmem:[%s170_s30 + $0x10] sm:$0x1] %vm262_vm1, %v254_v11  ;;  %v248_v16 = vpop.f32.mrb[3].mxu0 }
  0xec   : > { %260 = vst.msk [vmem:[%s170_s30] sm:$0xff] %vm259_vm2, %v246_v14  ;;  %v249_v17 = vadd.f32 %v248_v16, %v184_v13 }
  0xee   : > { %261 = vst.msk [vmem:[%s170_s30 + $0x8] sm:$0xff] %vm259_vm2, %v249_v17 }
  0xef PF: > { %s13_s12 = sadd.s32 1, %s366_s12  }
  0xf0   : > { %p10_p4 = scmp.ge.s32.totalorder %s13_s12, 4  }
  0xf2   :  { %12 = sbr.rel (!%p10_p4) target bundleno = 1 (0x1), region = 62 }

// kernel: _lambda_.8
= control target key start
LH: loop header
LB: loop body
LE: loop exit
PB: predicated region body
PF: predicated region fallthrough
CT: control target
= control target key end

     0   :  { %vm34_vm0 = vcmask 261120   ;;  %vm47_vm1 = vcmask 254976   ;;  %v574_v36 = vmov 0.0   ;;  %vm575_vm2 = vmmov 0   ;;  %s790_s0 = inlined_call_operand.vmem [shape: f32[34,32], index: 0, kind: input, shape index: {}]   ;;  %s791_s3 = inlined_call_operand.vmem [shape: bf16[32,64], index: 3, kind: input, shape index: {}]   ;;  %s792_s1 = inlined_call_operand.vmem [shape: f32[1,32], index: 1, kind: input, shape index: {}]   ;;  %s793_s2 = inlined_call_operand.vmem [shape: f32[1,32], index: 2, kind: input, shape index: {}]   ;;  %s794_s5 = inlined_call_operand.vmem [shape: bf16[64,32], index: 5, kind: input, shape index: {}]   ;;  %s795_s4 = inlined_call_operand.vmem [shape: f32[1,64], index: 4, kind: input, shape index: {}]   ;;  %s796_s6 = inlined_call_operand.vmem [shape: f32[1,32], index: 6, kind: input, shape index: {}]   ;;  %s797_s7 = inlined_call_operand.vmem [shape: f32[34,32], index: 7, kind: output, shape index: {}]  }
   0x1   :  { %v619_v0 = vld [vmem:[%s790_s0] sm:$0xff]  ;;  %v624_v1 = vld [vmem:[%s790_s0 + $0x10] sm:$0xff]  ;;  %v629_v2 = vld [vmem:[%s790_s0 + $0x8] sm:$0xff]  ;;  %500 = vmatprep.subr.bf16.mxu0 %v574_v36  ;;  %516 = vmatprep.subr.bf16.mxu1 %v574_v36  ;;  %vm392_vm5 = vcmask 523264  }
   0x2   :  { %v35_v3 = vsel %vm34_vm0, %v619_v0, 0.0  ;;  %v41_v4 = vsel %vm34_vm0, %v624_v1, 0.0  ;;  %v638_v5 = vld [vmem:[%s790_s0 + $0x18] sm:$0xff]  ;;  %v38_v6 = vsel %vm34_vm0, %v629_v2, 0.0  ;;  %v647_v8 = vld [vmem:[%s790_s0 + $0x20] sm:$0x3]  ;;  %504 = vmatprep.mubr.msk.bf16.mxu0 %vm575_vm2, %v574_v36  ;;  %524 = vmatprep.mubr.msk.bf16.mxu1 %vm575_vm2, %v574_v36 }
   0x3   :  { %36 = vadd.xlane.f32.xlu0 %v35_v3  ;;  %42 = vadd.xlane.f32.xlu1 %v41_v4  ;;  %v44_v7 = vsel %vm34_vm0, %v638_v5, 0.0  ;;  %v48_v9 = vsel %vm47_vm1, %v647_v8, 0.0  ;;  %v538_v35 = vld [vmem:[%s791_s3] sm:$0xff]   ;;  %v539_v37 = vld [vmem:[%s791_s3 + $0x8] sm:$0xff]  }
   0x4   :  { %501 = vmatpush3.bf16.msra.mxu0 %v538_v35  ;;  %v472_v55 = vld [vmem:[%s792_s1] ss:$0 sm:$0xff] }
   0x5   :  { %502 = vmatprep.subr.bf16.mxu0 %v574_v36  ;;  %v473_v60 = vld [vmem:[%s793_s2] ss:$0 sm:$0xff] }
   0x7   :  { %39 = vadd.xlane.f32.xlu0 %v38_v6  ;;  %45 = vadd.xlane.f32.xlu1 %v44_v7 }
   0x8   :  { %503 = vmatpush3.bf16.msra.mxu0 %v539_v37 }
   0xb   :  { %49 = vadd.xlane.f32.xlu0 %v48_v9 }
  0x90   :  { %v37_v10 = vpop.xlane.xlu0 %36  ;;  %v43_v11 = vpop.xlane.xlu1 %42 }
  0x91   :  { %v52_v12 = vmul.f32 0.03125, %v37_v10  ;;  %v54_v13 = vmul.f32 0.03125, %v43_v11 }
  0x93   :  { %v57_v14 = vsub.f32 %v619_v0, %v52_v12  ;;  %v653_v15 = vsub.f32 %v624_v1, %v54_v13 }
  0x94   :  { %v40_v16 = vpop.xlane.xlu0 %39  ;;  %v46_v17 = vpop.xlane.xlu1 %45 }
  0x95   :  { %v53_v18 = vmul.f32 0.03125, %v40_v16  ;;  %v55_v19 = vmul.f32 0.03125, %v46_v17  ;;  %v62_v20 = vmul.f32 %v57_v14, %v57_v14  ;;  %v64_v21 = vmul.f32 %v653_v15, %v653_v15 }
  0x97   :  { %v58_v22 = vsub.f32 %v629_v2, %v53_v18  ;;  %v60_v23 = vsub.f32 %v638_v5, %v55_v19  ;;  %v67_v24 = vsel %vm34_vm0, %v62_v20, 0.0  ;;  %v73_v27 = vsel %vm34_vm0, %v64_v21, 0.0  ;;  %v540_v19 = vld [vmem:[%s794_s5] sm:$0xff]   ;;  %v541_v20 = vld [vmem:[%s794_s5 + $0x8] sm:$0xff]   ;;  %v542_v21 = vld [vmem:[%s794_s5 + $0x10] sm:$0xff]  }
  0x98   :  { %68 = vadd.xlane.f32.xlu1 %v67_v24  ;;  %v50_v25 = vpop.xlane.xlu0 %49  ;;  %517 = vmatpush3.bf16.msra.mxu1 %v540_v19 }
  0x99   :  { %v56_v26 = vmul.f32 0.03125, %v50_v25  ;;  %v63_v28 = vmul.f32 %v58_v22, %v58_v22  ;;  %v65_v29 = vmul.f32 %v60_v23, %v60_v23  ;;  %518 = vmatprep.subr.bf16.mxu1 %v574_v36 }
  0x9b   :  { %v662_v30 = vsub.f32 %v647_v8, %v56_v26  ;;  %v70_v31 = vsel %vm34_vm0, %v63_v28, 0.0  ;;  %v76_v32 = vsel %vm34_vm0, %v65_v29, 0.0 }
  0x9c   :  { %74 = vadd.xlane.f32.xlu1 %v73_v27  ;;  %71 = vadd.xlane.f32.xlu0 %v70_v31 }
  0x9d   :  { %v66_v33 = vmul.f32 %v662_v30, %v662_v30  ;;  %519 = vmatpush3.bf16.msra.mxu1 %v541_v20 }
  0x9e   :  { %520 = vmatprep.subr.bf16.mxu1 %v574_v36 }
  0x9f   :  { %v79_v34 = vsel %vm47_vm1, %v66_v33, 0.0 }
  0xa0   :  { %77 = vadd.xlane.f32.xlu0 %v76_v32  ;;  %80 = vadd.xlane.f32.xlu1 %v79_v34 }
  0xa1   :  { %521 = vmatpush3.bf16.msra.mxu1 %v542_v21 }
  0xa2   :  { %522 = vmatprep.subr.bf16.mxu1 %v574_v36 }
 0x125   :  { %v69_v38 = vpop.xlane.xlu1 %68 }
 0x126   :  { %v82_v39 = vmul.f32 0.03125, %v69_v38 }
 0x128   :  { %v87_v40 = vadd.f32 1e-05, %v82_v39 }
 0x129   :  { %v75_v41 = vpop.xlane.xlu1 %74  ;;  %v72_v42 = vpop.xlane.xlu0 %71 }
 0x12a   :  { %544 = vrsqrt.f32 %v87_v40  ;;  %v84_v43 = vmul.f32 0.03125, %v75_v41  ;;  %v83_v44 = vmul.f32 0.03125, %v72_v42 }
 0x12c   :  { %v88_v45 = vadd.f32 1e-05, %v83_v44  ;;  %v89_v46 = vadd.f32 1e-05, %v84_v43 }
 0x12d   :  { %v81_v47 = vpop.xlane.xlu1 %80  ;;  %v78_v48 = vpop.xlane.xlu0 %77 }
 0x12e   :  { %v85_v49 = vmul.f32 0.03125, %v78_v48  ;;  %546 = vrsqrt.f32 %v88_v45  ;;  %v86_v50 = vmul.f32 0.03125, %v81_v47 }
 0x12f   :  { %548 = vrsqrt.f32 %v89_v46 }
 0x130   :  { %v90_v51 = vadd.f32 1e-05, %v85_v49  ;;  %v91_v52 = vadd.f32 1e-05, %v86_v50 }
 0x132   :  { %550 = vrsqrt.f32 %v90_v51 }
 0x133   :  { %552 = vrsqrt.f32 %v91_v52 }
 0x134   :  { %v545_v53 = vpop.eup %544 }
 0x135   :  { %v97_v54 = vmul.f32 %v545_v53, %v57_v14 }
 0x137   :  { %v108_v58 = vmul.f32 %v472_v55, %v97_v54 }
 0x138   :  { %v547_v56 = vpop.eup %546 }
 0x139   :  { %v98_v57 = vmul.f32 %v547_v56, %v58_v22  ;;  %v549_v59 = vpop.eup %548  ;;  %v119_v4 = vadd.f32 %v473_v60, %v108_v58  ;;  %v543_v22 = vld [vmem:[%s794_s5 + $0x18] sm:$0xff]  }
 0x13a   :  { %v99_v63 = vmul.f32 %v549_v59, %v653_v15  ;;  %523 = vmatpush3.bf16.msra.mxu1 %v543_v22 }
 0x13b   :  { %v109_v61 = vmul.f32 %v472_v55, %v98_v57 }
 0x13c   :  { %v551_v62 = vpop.eup %550  ;;  %v110_v11 = vmul.f32 %v472_v55, %v99_v63 }
 0x13d   :  { %v100_v3 = vmul.f32 %v551_v62, %v60_v23  ;;  %v120_v6 = vadd.f32 %v473_v60, %v109_v61  ;;  %v553_v10 = vpop.eup %552  ;;  %v474_v23 = vld [vmem:[%s795_s4] ss:$0 sm:$0xff] }
 0x13e   :  { %v101_v12 = vmul.f32 %v553_v10, %v662_v30  ;;  %v121_v14 = vadd.f32 %v473_v60, %v110_v11 }
 0x13f   :  { %v124_v7 = vpack.c.bf16 %v120_v6, %v119_v4  ;;  %v111_v9 = vmul.f32 %v472_v55, %v100_v3 }
 0x140   :  { %v112_v17 = vmul.f32 %v472_v55, %v101_v12 }
 0x141   :  { %505 = vmatmul.mubr.msk.bf16.vlgmr.msra.gmra.mrb[0].mxu0 %vm34_vm0, %v124_v7  ;;  %v122_v13 = vadd.f32 %v473_v60, %v111_v9 }
 0x142   :  { %508 = vmatprep.mubr.msk.bf16.mxu0 %vm575_vm2, %v574_v36  ;;  %v123_v15 = vadd.f32 %v473_v60, %v112_v17 }
 0x143   :  { %v125_v16 = vpack.c.bf16 %v122_v13, %v121_v14 }
 0x144   :  { %v126_v18 = vpack.c.bf16 %v123_v15, %v123_v15 }
 0x149   :  { %509 = vmatmul.mubr.msk.bf16.gmra.mrb[4].mxu0 %vm34_vm0, %v125_v16 }
 0x14a   :  { %512 = vmatprep.mubr.msk.bf16.mxu0 %vm575_vm2, %v574_v36 }
 0x151   :  { %513 = vmatmul.mubr.msk.bf16.gmra.mrb[8].mxu0 %vm34_vm0, %v126_v18 }
 0x214   :  { %v193_v24 = vpop.f32.mrb[0].mxu0 }
 0x215   :  { %v715_v25 = vadd.f32 %v474_v23, %v193_v24  ;;  %v506_v26 = vpop.f32.mrb[1].mxu0 }
 0x216   :  { %v196_v27 = vpop.f32.mrb[2].mxu0 }
 0x217   :  { %v718_v28 = vmul.f32 0.70710677, %v715_v25  ;;  %v720_v29 = vadd.f32 %v474_v23, %v196_v27  ;;  %v507_v30 = vpop.f32.mrb[3].mxu0 }
 0x219   :  { %v225_v31 = vand.u32 2147483647, %v718_v28  ;;  %v724_v32 = vmul.f32 0.70710677, %v720_v29  ;;  %vm325_vm3 = vcmp.ge.f32.partialorder %v718_v28, 0.0  ;;  %v216_v28 = vmul.f32 0.5, %v720_v29 }
 0x21b   :  { %v230_v33 = vmul.f32 0.3275911, %v225_v31  ;;  %v226_v34 = vand.u32 2147483647, %v724_v32  ;;  %v295_v50 = vmul.f32 %v225_v31, %v225_v31  ;;  %vm326_vm4 = vcmp.ge.f32.partialorder %v724_v32, 0.0 }
 0x21c   :  { %v201_v35 = vpop.f32.mrb[4].mxu0 }
 0x21d   :  { %v235_v37 = vadd.f32 1.0, %v230_v33  ;;  %v231_v38 = vmul.f32 0.3275911, %v226_v34  ;;  %v510_v39 = vpop.f32.mrb[5].mxu0  ;;  %v727_v40 = vadd.f32 %v474_v23, %v201_v35  ;;  %v296_v59 = vmul.f32 %v226_v34, %v226_v34 }
 0x21e   :  { %v204_v41 = vpop.f32.mrb[6].mxu0  ;;  %v300_v61 = vsub.f32 0.0, %v295_v50 }
 0x21f   :  { %554 = vrcp.f32 %v235_v37  ;;  %v236_v42 = vadd.f32 1.0, %v231_v38  ;;  %v511_v43 = vpop.f32.mrb[7].mxu0  ;;  %v730_v44 = vmul.f32 0.70710677, %v727_v40  ;;  %v732_v45 = vadd.f32 %v474_v23, %v204_v41 }
 0x220   :  { %v301_v9 = vsub.f32 0.0, %v296_v59  ;;  %v305_v10 = vmul.f32 1.442695, %v300_v61 }
 0x221   :  { %556 = vrcp.f32 %v236_v42  ;;  %v227_v46 = vand.u32 2147483647, %v730_v44  ;;  %v736_v47 = vmul.f32 0.70710677, %v732_v45  ;;  %vm327_vm6 = vcmp.ge.f32.partialorder %v730_v44, 0.0 }
 0x222   :  { %v307_v15 = vmul.f32 1.442695, %v301_v9  ;;  %v218_v44 = vmul.f32 0.5, %v732_v45  ;;  %v480_v45 = vld [vmem:[%s796_s6] ss:$0 sm:$0xff] }
 0x223   :  { %v232_v48 = vmul.f32 0.3275911, %v227_v46  ;;  %v228_v51 = vand.u32 2147483647, %v736_v47  ;;  %v297_v14 = vmul.f32 %v227_v46, %v227_v46  ;;  %vm328_vm7 = vcmp.ge.f32.partialorder %v736_v47, 0.0 }
 0x224   :  { %v209_v49 = vpop.f32.mrb[8].mxu0 }
 0x225   :  { %v739_v52 = vadd.f32 %v474_v23, %v209_v49  ;;  %v514_v53 = vpop.f32.mrb[9].mxu0  ;;  %v237_v54 = vadd.f32 1.0, %v232_v48  ;;  %v233_v56 = vmul.f32 0.3275911, %v228_v51  ;;  %v298_v19 = vmul.f32 %v228_v51, %v228_v51 }
 0x226   :  { %v212_v55 = vpop.f32.mrb[10].mxu0  ;;  %v302_v22 = vsub.f32 0.0, %v297_v14 }
 0x227   :  { %v742_v57 = vmul.f32 0.70710677, %v739_v52  ;;  %v515_v58 = vpop.f32.mrb[11].mxu0  ;;  %558 = vrcp.f32 %v237_v54  ;;  %v238_v62 = vadd.f32 1.0, %v233_v56  ;;  %v303_v33 = vsub.f32 0.0, %v298_v19 }
 0x228   :  { %v309_v37 = vmul.f32 1.442695, %v302_v22  ;;  %v219_v47 = vmul.f32 0.5, %v739_v52 }
 0x229   :  { %v555_v60 = vpop.eup %554  ;;  %v229_v63 = vand.u32 2147483647, %v742_v57  ;;  %560 = vrcp.f32 %v238_v62  ;;  %v311_v50 = vmul.f32 1.442695, %v303_v33  ;;  %v215_v33 = vmul.f32 0.5, %v715_v25 }
 0x22a   :  { %v250_v3 = vmul.f32 1.0614054, %v555_v60  ;;  %vm329_vm8 = vcmp.ge.f32.partialorder %v742_v57, 0.0 }
 0x22b   :  { %v234_v4 = vmul.f32 0.3275911, %v229_v63  ;;  %v557_v6 = vpop.eup %556  ;;  %v299_v34 = vmul.f32 %v229_v63, %v229_v63 }
 0x22c   :  { %v255_v7 = vadd.f32 -1.4531521, %v250_v3  ;;  %v251_v11 = vmul.f32 1.0614054, %v557_v6 }
 0x22d   :  { %v239_v12 = vadd.f32 1.0, %v234_v4  ;;  %v304_v51 = vsub.f32 0.0, %v299_v34 }
 0x22e   :  { %v260_v13 = vmul.f32 %v555_v60, %v255_v7  ;;  %v256_v16 = vadd.f32 -1.4531521, %v251_v11 }
 0x22f   :  { %562 = vrcp.f32 %v239_v12  ;;  %v313_v7 = vmul.f32 1.442695, %v304_v51 }
 0x230   :  { %v265_v17 = vadd.f32 1.4214138, %v260_v13  ;;  %564 = vpow2.f32 %v305_v10  ;;  %v261_v18 = vmul.f32 %v557_v6, %v256_v16 }
 0x231   :  { %v559_v20 = vpop.eup %558  ;;  %566 = vpow2.f32 %v307_v15 }
 0x232   :  { %v270_v21 = vmul.f32 %v555_v60, %v265_v17  ;;  %v266_v23 = vadd.f32 1.4214138, %v261_v18  ;;  %v252_v24 = vmul.f32 1.0614054, %v559_v20  ;;  %568 = vpow2.f32 %v309_v37 }
 0x233   :  { %v561_v27 = vpop.eup %560  ;;  %570 = vpow2.f32 %v311_v50 }
 0x234   :  { %v275_v26 = vadd.f32 -0.28449672, %v270_v21  ;;  %v271_v30 = vmul.f32 %v557_v6, %v266_v23  ;;  %v257_v31 = vadd.f32 -1.4531521, %v252_v24  ;;  %v253_v38 = vmul.f32 1.0614054, %v561_v27 }
 0x235   :  { %572 = vpow2.f32 %v313_v7 }
 0x236   :  { %v280_v35 = vmul.f32 %v555_v60, %v275_v26  ;;  %v276_v39 = vadd.f32 -0.28449672, %v271_v30  ;;  %v262_v41 = vmul.f32 %v559_v20, %v257_v31  ;;  %v258_v43 = vadd.f32 -1.4531521, %v253_v38 }
 0x238   :  { %v285_v42 = vadd.f32 0.2548296, %v280_v35  ;;  %v281_v48 = vmul.f32 %v557_v6, %v276_v39  ;;  %v267_v49 = vadd.f32 1.4214138, %v262_v41  ;;  %v263_v54 = vmul.f32 %v561_v27, %v258_v43 }
 0x239   :  { %v563_v46 = vpop.eup %562 }
 0x23a   :  { %v290_v53 = vmul.f32 %v555_v60, %v285_v42  ;;  %v254_v55 = vmul.f32 1.0614054, %v563_v46  ;;  %v565_v56 = vpop.eup %564  ;;  %v286_v58 = vadd.f32 0.2548296, %v281_v48  ;;  %v272_v59 = vmul.f32 %v559_v20, %v267_v49 }
 0x23b   :  { %v268_v62 = vadd.f32 1.4214138, %v263_v54  ;;  %v567_v9 = vpop.eup %566 }
 0x23c   :  { %v315_v61 = vmul.f32 %v565_v56, %v290_v53  ;;  %v259_v63 = vadd.f32 -1.4531521, %v254_v55  ;;  %v291_v3 = vmul.f32 %v557_v6, %v286_v58  ;;  %v277_v4 = vadd.f32 -0.28449672, %v272_v59  ;;  %v569_v24 = vpop.eup %568 }
 0x23d   :  { %v273_v11 = vmul.f32 %v561_v27, %v268_v62  ;;  %v571_v41 = vpop.eup %570  ;;  %v217_v59 = vmul.f32 0.5, %v727_v40 }
 0x23e   :  { %v320_v10 = vsub.f32 1.0, %v315_v61  ;;  %v264_v12 = vmul.f32 %v563_v46, %v259_v63  ;;  %v316_v13 = vmul.f32 %v567_v9, %v291_v3  ;;  %v282_v14 = vmul.f32 %v559_v20, %v277_v4 }
 0x23f   :  { %v278_v16 = vadd.f32 -0.28449672, %v273_v11  ;;  %v573_v53 = vpop.eup %572 }
 0x240   :  { %v330_v60 = vsub.f32 0.0, %v320_v10  ;;  %v269_v17 = vadd.f32 1.4214138, %v264_v12  ;;  %v321_v15 = vsub.f32 1.0, %v316_v13  ;;  %v287_v18 = vadd.f32 0.2548296, %v282_v14 }
 0x241   :  { %v283_v21 = vmul.f32 %v561_v27, %v278_v16 }
 0x242   :  { %v335_v19 = vsel %vm325_vm3, %v320_v10, %v330_v60  ;;  %v274_v6 = vmul.f32 %v563_v46, %v269_v17  ;;  %v331_v22 = vsub.f32 0.0, %v321_v15  ;;  %v292_v23 = vmul.f32 %v559_v20, %v287_v18 }
 0x243   :  { %v340_v26 = vadd.f32 1.0, %v335_v19  ;;  %v288_v30 = vadd.f32 0.2548296, %v283_v21 }
 0x244   :  { %v279_v31 = vadd.f32 -0.28449672, %v274_v6  ;;  %v336_v34 = vsel %vm326_vm4, %v321_v15, %v331_v22  ;;  %v317_v35 = vmul.f32 %v569_v24, %v292_v23 }
 0x245   :  { %v341_v37 = vadd.f32 1.0, %v336_v34  ;;  %v293_v38 = vmul.f32 %v561_v27, %v288_v30  ;;  %v345_v43 = vmul.f32 %v340_v26, %v215_v33 }
 0x246   :  { %v284_v39 = vmul.f32 %v563_v46, %v279_v31  ;;  %v322_v42 = vsub.f32 1.0, %v317_v35 }
 0x247   :  { %v346_v48 = vmul.f32 %v341_v37, %v216_v28  ;;  %v318_v20 = vmul.f32 %v571_v41, %v293_v38 }
 0x248   :  { %v289_v49 = vadd.f32 0.2548296, %v284_v39  ;;  %v332_v50 = vsub.f32 0.0, %v322_v42 }
 0x249   :  { %v350_v32 = vpack.c.bf16 %v346_v48, %v345_v43  ;;  %v323_v51 = vsub.f32 1.0, %v318_v20 }
 0x24a   :  { %v294_v25 = vmul.f32 %v563_v46, %v289_v49  ;;  %v337_v54 = vsel %vm327_vm6, %v322_v42, %v332_v50 }
 0x24b   :  { %v333_v55 = vsub.f32 0.0, %v323_v51  ;;  %525 = vmatmul.mubr.msk.bf16.vlgmr.msra.gmra.mrb[0].mxu1 %vm392_vm5, %v350_v32  ;;  %v342_v27 = vadd.f32 1.0, %v337_v54 }
 0x24c   :  { %v319_v29 = vmul.f32 %v573_v53, %v294_v25  ;;  %528 = vmatprep.mubr.msk.bf16.mxu1 %vm575_vm2, %v574_v36 }
 0x24d   :  { %v338_v56 = vsel %vm328_vm7, %v323_v51, %v333_v55  ;;  %v347_v62 = vmul.f32 %v342_v27, %v217_v59 }
 0x24e   :  { %v324_v58 = vsub.f32 1.0, %v319_v29  ;;  %v343_v61 = vadd.f32 1.0, %v338_v56 }
 0x250   :  { %v334_v46 = vsub.f32 0.0, %v324_v58  ;;  %v348_v63 = vmul.f32 %v343_v61, %v218_v44 }
 0x252   :  { %v339_v3 = vsel %vm329_vm8, %v324_v58, %v334_v46  ;;  %v351_v4 = vpack.c.bf16 %v348_v63, %v347_v62 }
 0x253   :  { %v344_v7 = vadd.f32 1.0, %v339_v3 }
 0x254   :  { %529 = vmatmul.mubr.msk.bf16.gmra.mrb[4].mxu1 %vm392_vm5, %v351_v4 }
 0x255   :  { %532 = vmatprep.mubr.msk.bf16.mxu1 %vm575_vm2, %v574_v36  ;;  %v349_v9 = vmul.f32 %v344_v7, %v219_v47 }
 0x257   :  { %v352_v40 = vpack.c.bf16 %v349_v9, %v349_v9 }
 0x25c   :  { %533 = vmatmul.mubr.msk.bf16.gmra.mrb[8].mxu1 %vm392_vm5, %v352_v40 }
 0x31e   :  { %v436_v10 = vpop.f32.mrb[0].mxu1 }
 0x31f   :  { %v437_v57 = vadd.f32 %v480_v45, %v436_v10  ;;  %v526_v11 = vpop.f32.mrb[1].mxu1 }
 0x320   :  { %v439_v12 = vpop.f32.mrb[2].mxu1 }
 0x321   :  { %v458_v13 = vadd.f32 %v437_v57, %v619_v0  ;;  %v440_v52 = vadd.f32 %v480_v45, %v439_v12  ;;  %v527_v14 = vpop.f32.mrb[3].mxu1 }
 0x323   :  { %463 = vst.msk [vmem:[%s797_s7] sm:$0xff] %vm34_vm0, %v458_v13  ;;  %v459_v36 = vadd.f32 %v440_v52, %v629_v2 }
 0x325   :  { %464 = vst.msk [vmem:[%s797_s7 + $0x8] sm:$0xff] %vm34_vm0, %v459_v36 }
 0x327   :  { %v444_v60 = vpop.f32.mrb[4].mxu1 }
 0x328   :  { %v445_v16 = vadd.f32 %v480_v45, %v444_v60  ;;  %v530_v17 = vpop.f32.mrb[5].mxu1 }
 0x329   :  { %v447_v15 = vpop.f32.mrb[6].mxu1 }
 0x32a   :  { %v460_v0 = vadd.f32 %v445_v16, %v624_v1  ;;  %v448_v18 = vadd.f32 %v480_v45, %v447_v15  ;;  %v531_v19 = vpop.f32.mrb[7].mxu1 }
 0x32c   :  { %465 = vst.msk [vmem:[%s797_s7 + $0x10] sm:$0xff] %vm34_vm0, %v460_v0  ;;  %v461_v2 = vadd.f32 %v448_v18, %v638_v5 }
 0x32e   :  { %466 = vst.msk [vmem:[%s797_s7 + $0x18] sm:$0xff] %vm34_vm0, %v461_v2 }
 0x32f   :  { %v452_v21 = vpop.f32.mrb[8].mxu1 }
 0x330   :  { %v453_v6 = vadd.f32 %v480_v45, %v452_v21  ;;  %v534_v22 = vpop.f32.mrb[9].mxu1 }
 0x331   :  { %v455_v23 = vpop.f32.mrb[10].mxu1 }
 0x332   :  { %v462_v1 = vadd.f32 %v453_v6, %v647_v8  ;;  %v535_v24 = vpop.f32.mrb[11].mxu1 }
 0x334   :  { %467 = vst.msk [vmem:[%s797_s7 + $0x20] sm:$0x3] %vm47_vm1, %v462_v1 }

// kernel: _lambda_.7
= control target key start
LH: loop header
LB: loop body
LE: loop exit
PB: predicated region body
PF: predicated region fallthrough
CT: control target
= control target key end

     0   :  { %s1495_s21 = smov 0   ;;  %s1617_s0 = inlined_call_operand.vmem [shape: f32[2,17,32], index: 0, kind: input, shape index: {}]   ;;  %s1618_s1 = inlined_call_operand.vmem [shape: f32[1,32], index: 1, kind: input, shape index: {}]   ;;  %s1619_s2 = inlined_call_operand.vmem [shape: f32[1,32], index: 2, kind: input, shape index: {}]   ;;  %s1620_s3 = inlined_call_operand.vmem [shape: bf16[32,96], index: 3, kind: input, shape index: {}]   ;;  %s1621_s4 = inlined_call_operand.vmem [shape: bf16[32,32], index: 4, kind: input, shape index: {}]   ;;  %s1622_s5 = inlined_call_operand.vmem [shape: f32[1,32], index: 5, kind: input, shape index: {}]   ;;  %s1623_s6 = inlined_call_operand.vmem [shape: f32[2,17,32], index: 6, kind: output, shape index: {}]  }
   0x1 LB: > { %s1194_s22 = sadd.s32 4294967295, %s1443_s21   ;;  %p1198_p0 = scmp.ge.s32.totalorder %s1443_s21, 1  ;;  %s1443_s21 = sphi %s1495_s21, %s16_s21  }
   0x2   : > { %p212_p1 = scmp.lt.s32.totalorder %s1443_s21, 3 }
   0x4   : > { %p213_p2 = pnand %p1198_p0, %p212_p1 }
   0x5   : > { %p242_p3 = scmp.lt.s32.totalorder (!%p213_p2), %s1194_s22, 1  ;;  %vm258_vm0 = vcmask (!%p213_p2), 261120   ;;  %vm265_vm1 = vcmask (!%p213_p2), 253952   ;;  %v1397_v21 = vld [vmem:[%s1620_s3] sm:$0xff] (!%p213_p2)   ;;  %v1398_v22 = vld [vmem:[%s1620_s3 + $0x8] sm:$0xff] (!%p213_p2)   ;;  %vm398_vm2 = vcmask (!%p213_p2), 64512  }
   0x6   : > { %216 = sbr.rel (%p213_p2) target bundleno = 1537 (0x601), region = 44  ;;  %1270 = vmatprep.subr.bf16.mxu0 (!%p213_p2), %v1397_v21  ;;  %v1201_v34 = vld [vmem:[%s1618_s1] ss:$0 sm:$0xff] (!%p213_p2)  ;;  %s1445_s11 = smov (!%p213_p2), 88   ;;  %vm749_vm3 = vcmask (!%p213_p2), 1040384   ;;  %vm742_vm4 = vcmask (!%p213_p2), 138240  }
   0x7   : > { %1271 = vmatpush3.bf16.msra.mxu0 (!%p213_p2), %v1397_v21  ;;  %v1202_v40 = vld [vmem:[%s1619_s2] ss:$0 sm:$0xff] (!%p213_p2)  ;;  %s1446_s12 = smov (!%p213_p2), 96   ;;  %s1447_s13 = smov (!%p213_p2), 80   ;;  %vm1043_vm5 = vcmask (!%p213_p2), 130048   ;;  %vm1047_vm6 = vcmask (!%p213_p2), 195584  }
   0x8   : > { %1272 = vmatprep.subr.bf16.mxu0 (!%p213_p2), %v1398_v22  ;;  %s1448_s14 = smov (!%p213_p2), 72   ;;  %s1449_s15 = smov (!%p213_p2), 120  }
   0x9   : > { %s1450_s16 = smov (!%p213_p2), 112   ;;  %s1451_s17 = smov (!%p213_p2), 104  }
   0xa   : > { %s1452_s18 = smov (!%p213_p2), 64   ;;  %s1453_s19 = smov (!%p213_p2), 56  }
   0xb   : > { %1273 = vmatpush3.bf16.msra.mxu0 (!%p213_p2), %v1398_v22  ;;  %s1454_s20 = smov (!%p213_p2), 48   ;;  %s1455_s24 = smov (!%p213_p2), 40  }
   0xc   : > { %s1457_s25 = smov (!%p213_p2), 8   ;;  %s1458_s30 = smov (!%p213_p2), 16  }
   0xd   : > { %s1625_s22 = smov (!%p242_p3, %s1194_s22), 1  ;;  %s1459_s7 = smov 24  }
   0xe   : > { %s1358_s23 = smul.u32 24, %s1625_s22 }
  0x10   : > { %s246_s26 = scalar_lea.vmem %s1617_s0, %s1358_s23 }
  0x11   : > { %v1511_v0 = vld [vmem:[%s246_s26] sm:$0xff]  ;;  %v1513_v1 = vld [vmem:[%s246_s26 + $0x10] sm:$0x1]  ;;  %v1515_v2 = vld [vmem:[%s246_s26 + $0x8] sm:$0xff] }
  0x12   : > { %v259_v3 = vsel %vm258_vm0, %v1511_v0, 0.0  ;;  %v266_v4 = vsel %vm265_vm1, %v1513_v1, 0.0  ;;  %v262_v5 = vsel %vm258_vm0, %v1515_v2, 0.0 }
  0x13   : > { %260 = vadd.xlane.f32.xlu0 %v259_v3  ;;  %267 = vadd.xlane.f32.xlu1 %v266_v4 }
  0x17   : > { %263 = vadd.xlane.f32.xlu0 %v262_v5 }
  0xa0   : > { %v261_v6 = vpop.xlane.xlu0 %260  ;;  %v268_v7 = vpop.xlane.xlu1 %267 }
  0xa1   : > { %v270_v8 = vmul.f32 0.03125, %v261_v6  ;;  %v272_v9 = vmul.f32 0.03125, %v268_v7 }
  0xa3   : > { %v273_v10 = vsub.f32 %v1511_v0, %v270_v8  ;;  %v275_v11 = vsub.f32 %v1513_v1, %v272_v9 }
  0xa4   : > { %v264_v12 = vpop.xlane.xlu0 %263 }
  0xa5   : > { %v271_v13 = vmul.f32 0.03125, %v264_v12  ;;  %v276_v14 = vmul.f32 %v273_v10, %v273_v10  ;;  %v278_v15 = vmul.f32 %v275_v11, %v275_v11 }
  0xa7   : > { %v274_v16 = vsub.f32 %v1515_v2, %v271_v13  ;;  %v279_v17 = vsel %vm258_vm0, %v276_v14, 0.0  ;;  %v285_v18 = vsel %vm265_vm1, %v278_v15, 0.0 }
  0xa8   : > { %280 = vadd.xlane.f32.xlu1 %v279_v17 }
  0xa9   : > { %v277_v19 = vmul.f32 %v274_v16, %v274_v16 }
  0xab   : > { %v282_v20 = vsel %vm258_vm0, %v277_v19, 0.0 }
  0xac   : > { %286 = vadd.xlane.f32.xlu1 %v285_v18  ;;  %283 = vadd.xlane.f32.xlu0 %v282_v20 }
 0x135   : > { %v281_v23 = vpop.xlane.xlu1 %280 }
 0x136   : > { %v288_v24 = vmul.f32 0.03125, %v281_v23 }
 0x138   : > { %v291_v25 = vadd.f32 1e-05, %v288_v24 }
 0x139   : > { %v287_v26 = vpop.xlane.xlu1 %286  ;;  %v284_v27 = vpop.xlane.xlu0 %283 }
 0x13a   : > { %1401 = vrsqrt.f32 %v291_v25  ;;  %v290_v28 = vmul.f32 0.03125, %v287_v26  ;;  %v289_v29 = vmul.f32 0.03125, %v284_v27 }
 0x13c   : > { %v293_v30 = vadd.f32 1e-05, %v290_v28  ;;  %v292_v31 = vadd.f32 1e-05, %v289_v29 }
 0x13e   : > { %1403 = vrsqrt.f32 %v293_v30 }
 0x13f   : > { %1405 = vrsqrt.f32 %v292_v31 }
 0x144   : > { %v1402_v32 = vpop.eup %1401 }
 0x145   : > { %v297_v33 = vmul.f32 %v1402_v32, %v273_v10 }
 0x147   : > { %v306_v39 = vmul.f32 %v1201_v34, %v297_v33 }
 0x148   : > { %v1404_v35 = vpop.eup %1403 }
 0x149   : > { %v1406_v36 = vpop.eup %1405  ;;  %v299_v37 = vmul.f32 %v1404_v35, %v275_v11  ;;  %v315_v44 = vadd.f32 %v1202_v40, %v306_v39 }
 0x14a   : > { %v298_v38 = vmul.f32 %v1406_v36, %v274_v16  ;;  %v1456_v16 = vmov 0  }
 0x14b   : > { %v308_v41 = vmul.f32 %v1201_v34, %v299_v37  ;;  %v1565_v17 = vsel %vm749_vm3, 65535, %v1456_v16 }
 0x14c   : > { %v307_v42 = vmul.f32 %v1201_v34, %v298_v38 }
 0x14d   : > { %v317_v43 = vadd.f32 %v1202_v40, %v308_v41 }
 0x14e   : > { %v316_v45 = vadd.f32 %v1202_v40, %v307_v42 }
 0x14f   : > { %v319_v46 = vpack.c.bf16 %v317_v43, %v317_v43 }
 0x150   : > { %v318_v47 = vpack.c.bf16 %v316_v45, %v315_v44 }
 0x152   : > { %1274 = vmatprep.mubr.msk.bf16.mxu0 %vm258_vm0, %v318_v47 }
 0x153   : > { %1275 = vmatmul.mubr.msk.bf16.vlgmr.msra.gmra.mrb[0].mxu0 %vm258_vm0, %v319_v46 }
 0x226   : > { %v1276_v48 = vpop.f32.mrb[0].mxu0 }
 0x227   : > { %v376_v49 = vpop.f32.mrb[1].mxu0  ;;  %v391_v53 = vpack.c.bf16 %v1276_v48, %v1276_v48 }
 0x228   : > { %v1277_v50 = vpop.f32.mrb[2].mxu0 }
 0x229   : > { %v379_v51 = vpop.f32.mrb[3].mxu0 }
 0x22a   : > { %v390_v52 = vpack.c.bf16 %v379_v51, %v376_v49 }
 0x22c   : > { %466 = vrot.lane.b32.xlu1 %v390_v52, %s1445_s11  ;;  %394 = vrot.lane.b32.xlu0 %v390_v52, %s1446_s12 }
 0x22d   : > { %1282 = vmatprep.mubr.msk.bf16.mxu1 %vm398_vm2, %v390_v52 }
 0x230   : > { %396 = vrot.lane.b32.xlu1 %v391_v53, %s1446_s12  ;;  %537 = vrot.lane.b32.xlu0 %v390_v52, %s1447_s13  ;;  %s251_s12 = scalar_lea.vmem %s1623_s6, %s1358_s23 }
 0x234   : > { %468 = vrot.lane.b32.xlu1 %v391_v53, %s1445_s11  ;;  %608 = vrot.lane.b32.xlu0 %v390_v52, %s1448_s14 }
 0x238   : > { %462 = vrot.lane.b32.xlu1 %v390_v52, %s1449_s15  ;;  %539 = vrot.lane.b32.xlu0 %v391_v53, %s1447_s13 }
 0x23c   : > { %464 = vrot.lane.b32.xlu1 %v391_v53, %s1449_s15  ;;  %533 = vrot.lane.b32.xlu0 %v390_v52, %s1450_s16 }
 0x240   : > { %610 = vrot.lane.b32.xlu1 %v391_v53, %s1448_s14  ;;  %604 = vrot.lane.b32.xlu0 %v390_v52, %s1451_s17 }
 0x244   : > { %535 = vrot.lane.b32.xlu1 %v391_v53, %s1450_s16  ;;  %737 = vrot.lane.b32.xlu0 %v390_v52, %s1452_s18 }
 0x248   : > { %606 = vrot.lane.b32.xlu1 %v391_v53, %s1451_s17  ;;  %739 = vrot.lane.b32.xlu0 %v391_v53, %s1452_s18 }
 0x24c   : > { %808 = vrot.lane.b32.xlu1 %v390_v52, %s1453_s19  ;;  %875 = vrot.lane.b32.xlu0 %v390_v52, %s1454_s20 }
 0x250   : > { %810 = vrot.lane.b32.xlu1 %v391_v53, %s1453_s19  ;;  %877 = vrot.lane.b32.xlu0 %v391_v53, %s1454_s20 }
 0x254   : > { %942 = vrot.lane.b32.xlu1 %v390_v52, %s1455_s24 }
 0x258   : > { %944 = vrot.lane.b32.xlu1 %v391_v53, %s1455_s24 }
 0x29e   : > { %v467_v54 = vpop.permute.xlu1 %466  ;;  %v395_v55 = vpop.permute.xlu0 %394 }
 0x29f   : > { %v477_v56 = vsel %vm398_vm2, %v467_v54, 0  ;;  %1350 = vmatprep.subr.msk.bf16.mxu1 %vm398_vm2, %v395_v55  ;;  %1352 = vmatprep.subr.msk.bf16.mxu0 %vm398_vm2, %v467_v54  ;;  %v406_v57 = vsel %vm398_vm2, %v395_v55, 0 }
 0x2a0   : > { %1279 = vmatpush3.bf16.xpose.msra.mxu1 %v406_v57  ;;  %1287 = vmatpush3.bf16.xpose.msra.mxu0 %v477_v56 }
 0x2a2   : > { %v397_v58 = vpop.permute.xlu1 %396  ;;  %v538_v59 = vpop.permute.xlu0 %537 }
 0x2a3   : > { %1351 = vmatprep.subr.msk.bf16.mxu1 %vm398_vm2, %v397_v58  ;;  %v409_v63 = vsel %vm398_vm2, %v397_v58, 0  ;;  %v548_v7 = vsel %vm398_vm2, %v538_v59, 0 }
 0x2a6   : > { %v469_v60 = vpop.permute.xlu1 %468  ;;  %v609_v61 = vpop.permute.xlu0 %608 }
 0x2a7   : > { %v480_v62 = vsel %vm398_vm2, %v469_v60, 0  ;;  %1353 = vmatprep.subr.msk.bf16.mxu0 %vm398_vm2, %v469_v60  ;;  %v619_v8 = vsel %vm398_vm2, %v609_v61, 0 }
 0x2a8   : > { %1281 = vmatpush3.bf16.xpose.msra.mxu1 %v409_v63  ;;  %1289 = vmatpush3.bf16.xpose.msra.mxu0 %v480_v62 }
 0x2a9   : > { %1354 = vmatprep.subr.msk.bf16.mxu1 %vm398_vm2, %v538_v59  ;;  %1356 = vmatprep.subr.msk.bf16.mxu0 %vm398_vm2, %v609_v61 }
 0x2aa   : > { %v463_v3 = vpop.permute.xlu1 %462  ;;  %v540_v4 = vpop.permute.xlu0 %539 }
 0x2ab   : > { %1290 = vmatprep.mubr.msk.bf16.mxu0 %vm398_vm2, %v463_v3  ;;  %v551_v13 = vsel %vm398_vm2, %v540_v4, 0 }
 0x2ae   : > { %v465_v5 = vpop.permute.xlu1 %464  ;;  %v534_v6 = vpop.permute.xlu0 %533 }
 0x2af   : > { %1283 = vmatmul.mubr.msk.bf16.vlgmr.msra.gmra.mrb[0].mxu1 %vm398_vm2, %v391_v53  ;;  %1291 = vmatmul.mubr.msk.bf16.vlgmr.msra.gmra.mrb[4].mxu0 %vm398_vm2, %v465_v5 }
 0x2b0   : > { %1295 = vmatpush3.bf16.xpose.msra.mxu1 %v548_v7  ;;  %1298 = vmatprep.mubr.msk.bf16.mxu1 %vm398_vm2, %v534_v6 }
 0x2b1   : > { %1303 = vmatpush3.bf16.xpose.msra.mxu0 %v619_v8  ;;  %1355 = vmatprep.subr.msk.bf16.mxu1 %vm398_vm2, %v540_v4 }
 0x2b2   : > { %v611_v9 = vpop.permute.xlu1 %610  ;;  %v605_v10 = vpop.permute.xlu0 %604 }
 0x2b3   : > { %1357 = vmatprep.subr.msk.bf16.mxu0 %vm398_vm2, %v611_v9  ;;  %1306 = vmatprep.mubr.msk.bf16.mxu0 %vm398_vm2, %v605_v10  ;;  %v622_v14 = vsel %vm398_vm2, %v611_v9, 0 }
 0x2b6   : > { %v536_v11 = vpop.permute.xlu1 %535  ;;  %v738_v12 = vpop.permute.xlu0 %737 }
 0x2b8   : > { %1297 = vmatpush3.bf16.xpose.msra.mxu1 %v551_v13 }
 0x2b9   : > { %1305 = vmatpush3.bf16.xpose.msra.mxu0 %v622_v14  ;;  %1310 = vmatprep.subr.bf16.mxu1 %v738_v12 }
 0x2ba   : > { %v607_v15 = vpop.permute.xlu1 %606  ;;  %v740_v18 = vpop.permute.xlu0 %739 }
 0x2bb   : > { %v753_v20 = vand.u32 %v1565_v17, %v740_v18 }
 0x2be   : > { %v809_v19 = vpop.permute.xlu1 %808  ;;  %v1571_v23 = vpop.permute.xlu0 %875 }
 0x2bf   : > { %1299 = vmatmul.mubr.msk.bf16.vlgmr.msra.gmra.mrb[4].mxu1 %vm398_vm2, %v536_v11  ;;  %1318 = vmatprep.subr.bf16.mxu0 %v809_v19 }
 0x2c0   : > { %1307 = vmatmul.mubr.msk.bf16.vlgmr.msra.gmra.mrb[8].mxu0 %vm398_vm2, %v607_v15  ;;  %1311 = vmatpush3.bf16.msra.mxu1 %v738_v12 }
 0x2c1   : > { %1319 = vmatpush3.bf16.msra.mxu0 %v809_v19  ;;  %1312 = vmatprep.subr.bf16.mxu1 %v753_v20 }
 0x2c2   : > { %v811_v21 = vpop.permute.xlu1 %810 }
 0x2c3   : > { %v820_v22 = vand.u32 %v811_v21, %v1565_v17 }
 0x2c4   : > { %1313 = vmatpush3.bf16.msra.mxu1 %v753_v20 }
 0x2c5   : > { %1320 = vmatprep.subr.bf16.mxu0 %v820_v22  ;;  %1326 = vmatprep.subr.bf16.mxu1 %v1571_v23 }
 0x2c6   : > { %v1574_v24 = vpop.permute.xlu1 %942  ;;  %1321 = vmatpush3.bf16.msra.mxu0 %v820_v22 }
 0x2c7   : > { %1334 = vmatprep.subr.bf16.mxu0 %v1574_v24 }
 0x382   : > { %v1284_v25 = vpop.f32.mrb[0].mxu1  ;;  %v1292_v26 = vpop.f32.mrb[4].mxu0 }
 0x383   : > { %v461_v27 = vmul.f32 0.35355338, %v1284_v25  ;;  %v532_v28 = vmul.f32 0.35355338, %v1292_v26  ;;  %v445_v29 = vpop.f32.mrb[1].mxu1  ;;  %v516_v30 = vpop.f32.mrb[5].mxu0 }
 0x384   : > { %v459_v31 = vmul.f32 0.35355338, %v445_v29  ;;  %v530_v32 = vmul.f32 0.35355338, %v516_v30  ;;  %v1285_v33 = vpop.f32.mrb[2].mxu1  ;;  %v1293_v34 = vpop.f32.mrb[6].mxu0 }
 0x385   : > { %v677_v35 = vmax.f32 %v461_v27, %v532_v28  ;;  %v448_v36 = vpop.f32.mrb[3].mxu1  ;;  %v519_v37 = vpop.f32.mrb[7].mxu0 }
 0x386   : > { %v675_v38 = vmax.f32 %v459_v31, %v530_v32  ;;  %v460_v39 = vmul.f32 0.35355338, %v448_v36  ;;  %v531_v40 = vmul.f32 0.35355338, %v519_v37 }
 0x388   : > { %v676_v41 = vmax.f32 %v460_v39, %v531_v40 }
 0x392   : > { %v1300_v42 = vpop.f32.mrb[4].mxu1 }
 0x393   : > { %v603_v43 = vmul.f32 0.35355338, %v1300_v42  ;;  %v1308_v44 = vpop.f32.mrb[8].mxu0  ;;  %v587_v45 = vpop.f32.mrb[5].mxu1 }
 0x394   : > { %v601_v46 = vmul.f32 0.35355338, %v587_v45  ;;  %v658_v47 = vpop.f32.mrb[9].mxu0  ;;  %v1301_v48 = vpop.f32.mrb[6].mxu1  ;;  %v674_v50 = vmul.f32 0.35355338, %v1308_v44 }
 0x395   : > { %v680_v49 = vmax.f32 %v677_v35, %v603_v43  ;;  %v1309_v51 = vpop.f32.mrb[10].mxu0  ;;  %v590_v52 = vpop.f32.mrb[7].mxu1  ;;  %v672_v54 = vmul.f32 0.35355338, %v658_v47 }
 0x396   : > { %v678_v53 = vmax.f32 %v675_v38, %v601_v46  ;;  %v602_v55 = vmul.f32 0.35355338, %v590_v52  ;;  %v661_v56 = vpop.f32.mrb[11].mxu0 }
 0x397   : > { %v683_v57 = vmax.f32 %v680_v49, %v674_v50  ;;  %v673_v60 = vmul.f32 0.35355338, %v661_v56 }
 0x398   : > { %v681_v58 = vmax.f32 %v678_v53, %v672_v54  ;;  %v679_v59 = vmax.f32 %v676_v41, %v602_v55 }
 0x399   : > { %v686_v61 = vsub.f32 %v461_v27, %v683_v57  ;;  %v695_v62 = vsub.f32 %v532_v28, %v683_v57  ;;  %v704_v63 = vsub.f32 %v603_v43, %v683_v57  ;;  %v713_v3 = vsub.f32 %v674_v50, %v683_v57 }
 0x39a   : > { %v684_v4 = vsub.f32 %v459_v31, %v681_v58  ;;  %v693_v5 = vsub.f32 %v530_v32, %v681_v58  ;;  %v702_v6 = vsub.f32 %v601_v46, %v681_v58  ;;  %v711_v7 = vsub.f32 %v672_v54, %v681_v58 }
 0x39b   : > { %v691_v8 = vmul.f32 1.442695, %v686_v61  ;;  %v700_v9 = vmul.f32 1.442695, %v695_v62  ;;  %v709_v10 = vmul.f32 1.442695, %v704_v63  ;;  %v682_v11 = vmax.f32 %v679_v59, %v673_v60 }
 0x39c   : > { %v718_v12 = vmul.f32 1.442695, %v713_v3  ;;  %v687_v13 = vmul.f32 1.442695, %v684_v4  ;;  %v696_v14 = vmul.f32 1.442695, %v693_v5  ;;  %v878_v3 = vpop.permute.xlu0 %877 }
 0x39d   : > { %1407 = vpow2.f32 %v691_v8  ;;  %v685_v15 = vsub.f32 %v460_v39, %v682_v11  ;;  %v694_v16 = vsub.f32 %v531_v40, %v682_v11  ;;  %v703_v18 = vsub.f32 %v602_v55, %v682_v11  ;;  %v945_v8 = vpop.permute.xlu1 %944 }
 0x39e   : > { %1409 = vpow2.f32 %v700_v9  ;;  %v712_v19 = vsub.f32 %v673_v60, %v682_v11  ;;  %v705_v20 = vmul.f32 1.442695, %v702_v6  ;;  %v714_v21 = vmul.f32 1.442695, %v711_v7 }
 0x39f   : > { %1411 = vpow2.f32 %v709_v10  ;;  %v689_v22 = vmul.f32 1.442695, %v685_v15  ;;  %v698_v25 = vmul.f32 1.442695, %v694_v16  ;;  %v707_v26 = vmul.f32 1.442695, %v703_v18 }
 0x3a0   : > { %1413 = vpow2.f32 %v718_v12  ;;  %v716_v27 = vmul.f32 1.442695, %v712_v19  ;;  %v887_v11 = vand.u32 %v878_v3, %v1565_v17  ;;  %v954_v12 = vand.u32 %v945_v8, %v1565_v17 }
 0x3a1   : > { %1415 = vpow2.f32 %v687_v13 }
 0x3a2   : > { %1417 = vpow2.f32 %v696_v14 }
 0x3a3   : > { %1419 = vpow2.f32 %v705_v20 }
 0x3a4   : > { %1421 = vpow2.f32 %v714_v21  ;;  %v1399_v21 = vld [vmem:[%s1621_s4] sm:$0xff]  }
 0x3a5   : > { %1423 = vpow2.f32 %v689_v22 }
 0x3a6   : > { %1425 = vpow2.f32 %v698_v25  ;;  %v1400_v25 = vld [vmem:[%s1621_s4 + $0x8] sm:$0xff]  }
 0x3a7   : > { %v1408_v28 = vpop.eup %1407  ;;  %1427 = vpow2.f32 %v707_v26 }
 0x3a8   : > { %v1410_v29 = vpop.eup %1409  ;;  %1429 = vpow2.f32 %v716_v27 }
 0x3a9   : > { %v1412_v30 = vpop.eup %1411  ;;  %v722_v31 = vadd.f32 %v1410_v29, %v1408_v28 }
 0x3aa   : > { %v1414_v32 = vpop.eup %1413 }
 0x3ab   : > { %v1416_v33 = vpop.eup %1415  ;;  %v725_v34 = vadd.f32 %v1412_v30, %v722_v31 }
 0x3ac   : > { %v1418_v35 = vpop.eup %1417 }
 0x3ad   : > { %v1420_v36 = vpop.eup %1419  ;;  %v728_v37 = vadd.f32 %v1414_v32, %v725_v34  ;;  %v720_v38 = vadd.f32 %v1418_v35, %v1416_v33 }
 0x3ae   : > { %v1422_v39 = vpop.eup %1421 }
 0x3af   : > { %v1424_v40 = vpop.eup %1423  ;;  %1431 = vrcp.f32 %v728_v37  ;;  %v723_v41 = vadd.f32 %v1420_v36, %v720_v38 }
 0x3b0   : > { %v1426_v42 = vpop.eup %1425 }
 0x3b1   : > { %v726_v43 = vadd.f32 %v1422_v39, %v723_v41  ;;  %v721_v44 = vadd.f32 %v1426_v42, %v1424_v40  ;;  %v1428_v45 = vpop.eup %1427 }
 0x3b2   : > { %v1430_v47 = vpop.eup %1429 }
 0x3b3   : > { %1433 = vrcp.f32 %v726_v43  ;;  %v724_v46 = vadd.f32 %v1428_v45, %v721_v44 }
 0x3b5   : > { %v727_v48 = vadd.f32 %v1430_v47, %v724_v46 }
 0x3b7   : > { %1435 = vrcp.f32 %v727_v48 }
 0x3b9   : > { %v1432_v49 = vpop.eup %1431 }
 0x3ba   : > { %v734_v50 = vmul.f32 %v1432_v49, %v1408_v28  ;;  %v805_v51 = vmul.f32 %v1432_v49, %v1410_v29  ;;  %v872_v52 = vmul.f32 %v1432_v49, %v1412_v30  ;;  %v939_v53 = vmul.f32 %v1432_v49, %v1414_v32 }
 0x3bc   : > { %v736_v9 = vpack.c.bf16 %v734_v50, %v734_v50  ;;  %v807_v10 = vpack.c.bf16 %v805_v51, %v805_v51  ;;  %v874_v13 = vpack.c.bf16 %v872_v52, %v872_v52  ;;  %v941_v14 = vpack.c.bf16 %v939_v53, %v939_v53 }
 0x3bd   : > { %v1434_v54 = vpop.eup %1433 }
 0x3be   : > { %v732_v55 = vmul.f32 %v1434_v54, %v1416_v33  ;;  %v803_v56 = vmul.f32 %v1434_v54, %v1418_v35  ;;  %v870_v57 = vmul.f32 %v1434_v54, %v1420_v36  ;;  %v937_v58 = vmul.f32 %v1434_v54, %v1422_v39 }
 0x3c1   : > { %v1436_v59 = vpop.eup %1435 }
 0x3c2   : > { %v733_v60 = vmul.f32 %v1436_v59, %v1424_v40  ;;  %v804_v61 = vmul.f32 %v1436_v59, %v1426_v42  ;;  %v871_v62 = vmul.f32 %v1436_v59, %v1428_v45  ;;  %v938_v63 = vmul.f32 %v1436_v59, %v1430_v47 }
 0x3c4   : > { %v735_v4 = vpack.c.bf16 %v733_v60, %v732_v55  ;;  %v806_v5 = vpack.c.bf16 %v804_v61, %v803_v56  ;;  %v873_v6 = vpack.c.bf16 %v871_v62, %v870_v57  ;;  %v940_v7 = vpack.c.bf16 %v938_v63, %v937_v58  ;;  %v1227_v60 = vld [vmem:[%s1622_s5] ss:$0 sm:$0xff] }
 0x3c6   : > { %1314 = vmatprep.mubr.msk.bf16.mxu1 %vm742_vm4, %v735_v4  ;;  %1322 = vmatprep.mubr.msk.bf16.mxu0 %vm742_vm4, %v806_v5 }
 0x3c7   : > { %1315 = vmatmul.mubr.msk.bf16.vlgmr.msra.gmra.mrb[8].mxu1 %vm742_vm4, %v736_v9  ;;  %1323 = vmatmul.mubr.msk.bf16.vlgmr.msra.gmra.mrb[12].mxu0 %vm742_vm4, %v807_v10 }
 0x3c8   : > { %1327 = vmatpush3.bf16.msra.mxu1 %v1571_v23  ;;  %1335 = vmatpush3.bf16.msra.mxu0 %v1574_v24 }
 0x3c9   : > { %1328 = vmatprep.subr.bf16.mxu1 %v887_v11  ;;  %1330 = vmatprep.mubr.msk.bf16.mxu1 %vm742_vm4, %v873_v6 }
 0x3ca   : > { %1336 = vmatprep.subr.bf16.mxu0 %v954_v12  ;;  %1338 = vmatprep.mubr.msk.bf16.mxu0 %vm742_vm4, %v940_v7 }
 0x3cc   : > { %1329 = vmatpush3.bf16.msra.mxu1 %v887_v11  ;;  %1337 = vmatpush3.bf16.msra.mxu0 %v954_v12 }
 0x3cd   : > { %1342 = vmatprep.subr.bf16.mxu1 %v1399_v21 }
 0x3cf   : > { %1331 = vmatmul.mubr.msk.bf16.vlgmr.msra.gmra.mrb[12].mxu1 %vm742_vm4, %v874_v13  ;;  %1339 = vmatmul.mubr.msk.bf16.vlgmr.msra.gmra.mrb[16].mxu0 %vm742_vm4, %v941_v14 }
 0x3d0   : > { %1343 = vmatpush3.bf16.msra.mxu1 %v1399_v21 }
 0x3d1   : > { %1344 = vmatprep.subr.bf16.mxu1 %v1400_v25 }
 0x3d4   : > { %1345 = vmatpush3.bf16.msra.mxu1 %v1400_v25 }
 0x49a   : > { %v1316_v15 = vpop.f32.mrb[8].mxu1  ;;  %v1324_v17 = vpop.f32.mrb[12].mxu0 }
 0x49b   : > { %1011 = vrot.lane.b32.xlu1 %v1324_v17, %s1457_s25  ;;  %v789_v23 = vpop.f32.mrb[9].mxu1  ;;  %v856_v24 = vpop.f32.mrb[13].mxu0 }
 0x49c   : > { %v1317_v16 = vpop.f32.mrb[10].mxu1  ;;  %v1325_v18 = vpop.f32.mrb[14].mxu0 }
 0x49d   : > { %v792_v19 = vpop.f32.mrb[11].mxu1  ;;  %v859_v20 = vpop.f32.mrb[15].mxu0 }
 0x49e   : > { %v1382_v22 = vpack.i.bf16 %v859_v20, %v856_v24 }
 0x4a0   : > { %1383 = vrot.lane.b32.xlu0 %v1382_v22, %s1457_s25 }
 0x4a2   : > { %v1332_v26 = vpop.f32.mrb[12].mxu1  ;;  %v1340_v27 = vpop.f32.mrb[16].mxu0 }
 0x4a3   : > { %v990_v28 = vpop.f32.mrb[17].mxu0  ;;  %1023 = vrot.lane.b32.xlu1 %v1332_v26, %s1458_s30  ;;  %v923_v29 = vpop.f32.mrb[13].mxu1 }
 0x4a4   : > { %v1333_v30 = vpop.f32.mrb[14].mxu1  ;;  %v1341_v31 = vpop.f32.mrb[18].mxu0 }
 0x4a5   : > { %v926_v32 = vpop.f32.mrb[15].mxu1  ;;  %v993_v33 = vpop.f32.mrb[19].mxu0 }
 0x4a6   : > { %v1387_v34 = vpack.i.bf16 %v926_v32, %v923_v29  ;;  %v1392_v35 = vpack.i.bf16 %v993_v33, %v990_v28 }
 0x4a7   : > { %1035 = vrot.lane.b32.xlu1 %v1340_v27, %s1459_s7 }
 0x4a8   : > { %1388 = vrot.lane.b32.xlu0 %v1387_v34, %s1458_s30 }
 0x4ac   : > { %1393 = vrot.lane.b32.xlu0 %v1392_v35, %s1459_s7 }
 0x50d   : > { %v1012_v36 = vpop.permute.xlu1 %1011 }
 0x50e   : > { %v1042_v45 = vsel %vm398_vm2, %v1316_v15, %v1012_v36 }
 0x512   : > { %v1384_v37 = vpop.permute.xlu0 %1383 }
 0x513   : > { %v1385_v39 = vunpack.i.l.bf16 %v1384_v37  ;;  %v1386_v41 = vunpack.i.h.bf16 %v1384_v37 }
 0x515   : > { %v1024_v38 = vpop.permute.xlu1 %1023  ;;  %v1040_v46 = vsel %vm398_vm2, %v789_v23, %v1385_v39  ;;  %v1041_v48 = vsel %vm398_vm2, %v792_v19, %v1386_v41 }
 0x516   : > { %v1046_v49 = vsel %vm1043_vm5, %v1042_v45, %v1024_v38 }
 0x519   : > { %v1036_v44 = vpop.permute.xlu1 %1035 }
 0x51a   : > { %v1389_v40 = vpop.permute.xlu0 %1388  ;;  %v1050_v52 = vsel %vm1047_vm6, %v1046_v49, %v1036_v44 }
 0x51b   : > { %v1391_v42 = vunpack.i.h.bf16 %v1389_v40  ;;  %v1390_v43 = vunpack.i.l.bf16 %v1389_v40  ;;  %v1052_v58 = vpack.c.bf16 %v1050_v52, %v1050_v52 }
 0x51d   : > { %v1045_v53 = vsel %vm1043_vm5, %v1041_v48, %v1391_v42  ;;  %v1044_v54 = vsel %vm1043_vm5, %v1040_v46, %v1390_v43 }
 0x51e   : > { %v1394_v47 = vpop.permute.xlu0 %1393 }
 0x51f   : > { %v1396_v50 = vunpack.i.h.bf16 %v1394_v47  ;;  %v1395_v51 = vunpack.i.l.bf16 %v1394_v47 }
 0x521   : > { %v1048_v55 = vsel %vm1047_vm6, %v1044_v54, %v1395_v51  ;;  %v1049_v56 = vsel %vm1047_vm6, %v1045_v53, %v1396_v50 }
 0x522   : > { %v1051_v57 = vpack.c.bf16 %v1049_v56, %v1048_v55 }
 0x524   : > { %1346 = vmatprep.mubr.msk.bf16.mxu1 %vm258_vm0, %v1051_v57 }
 0x525   : > { %1347 = vmatmul.mubr.msk.bf16.vlgmr.msra.gmra.mrb[16].mxu1 %vm258_vm0, %v1052_v58 }
 0x5f8   : > { %v1348_v59 = vpop.f32.mrb[16].mxu1 }
 0x5f9   : > { %v1125_v61 = vadd.f32 %v1348_v59, %v1513_v1  ;;  %v1109_v62 = vpop.f32.mrb[17].mxu1 }
 0x5fa   : > { %v1123_v63 = vadd.f32 %v1109_v62, %v1511_v0  ;;  %v1349_v3 = vpop.f32.mrb[18].mxu1 }
 0x5fb   : > { %v1135_v4 = vadd.f32 %v1227_v60, %v1125_v61  ;;  %v1112_v5 = vpop.f32.mrb[19].mxu1 }
 0x5fc   : > { %v1133_v6 = vadd.f32 %v1227_v60, %v1123_v63  ;;  %v1124_v7 = vadd.f32 %v1112_v5, %v1515_v2 }
 0x5fd   : > { %1138 = vst.msk [vmem:[%s251_s12 + $0x10] sm:$0x1] %vm265_vm1, %v1135_v4 }
 0x5fe   : > { %1136 = vst.msk [vmem:[%s251_s12] sm:$0xff] %vm258_vm0, %v1133_v6  ;;  %v1134_v8 = vadd.f32 %v1227_v60, %v1124_v7 }
 0x600   : > { %1137 = vst.msk [vmem:[%s251_s12 + $0x8] sm:$0xff] %vm258_vm0, %v1134_v8 }
 0x601 PF: > { %s16_s21 = sadd.s32 1, %s1443_s21  }
 0x602   : > { %p13_p4 = scmp.ge.s32.totalorder %s16_s21, 4  }
 0x604   :  { %15 = sbr.rel (!%p13_p4) target bundleno = 1 (0x1), region = 74 }

// kernel: _lambda_.11
= control target key start
LH: loop header
LB: loop body
LE: loop exit
PB: predicated region body
PF: predicated region fallthrough
CT: control target
= control target key end

     0   :  { %vm25_vm0 = vcmask 254976   ;;  %s249_s0 = inlined_call_operand.vmem [shape: f32[2,32], index: 0, kind: input, shape index: {}]   ;;  %s250_s1 = inlined_call_operand.vmem [shape: f32[1,32], index: 1, kind: input, shape index: {}]   ;;  %s251_s2 = inlined_call_operand.vmem [shape: f32[1,32], index: 2, kind: input, shape index: {}]   ;;  %s252_s3 = inlined_call_operand.vmem [shape: bf16[32,10], index: 3, kind: input, shape index: {}]   ;;  %s253_s4 = inlined_call_operand.vmem [shape: f32[1,10], index: 4, kind: input, shape index: {}]   ;;  %s254_s5 = inlined_call_operand.hbm [shape: f32[2,10], index: 5, kind: output, shape index: {}]  }
   0x1   :  { %v22_v0 = vld [vmem:[%s249_s0] sm:$0x3] }
   0x2   :  { %v26_v1 = vsel %vm25_vm0, %v22_v0, 0.0 }
   0x3   :  { %27 = vadd.xlane.f32.xlu0 %v26_v1 }
   0x4   :  { %10 = vsyncpa [#allocation3], 0  ;;  %v158_v7 = vld [vmem:[%s252_s3] sm:$0xff]   ;;  %v186_v8 = vmov 0.0   ;;  %v159_v9 = vld [vmem:[%s252_s3 + $0x8] sm:$0xff]   ;;  %vm187_vm1 = vmmov 0  }
   0x5   :  { %147 = vmatprep.subr.bf16.mxu0 %v186_v8  ;;  %151 = vmatprep.mubr.msk.bf16.mxu0 %vm187_vm1, %v186_v8  ;;  %v138_v14 = vld [vmem:[%s250_s1] ss:$0 sm:$0xff]  ;;  %vm78_vm2 = vcmask 261120   ;;  %s188_s28 = smov [#allocation2]   ;;  %vm122_vm3 = vcmask 74752  }
   0x6   :  { %148 = vmatpush3.bf16.msra.mxu0 %v158_v7  ;;  %v139_v16 = vld [vmem:[%s251_s2] ss:$0 sm:$0xff]  ;;  %s130_s29 = sshll.u32 %s188_s28, 4  ;;  %s131_s29 = int_to_ptr.vmem [resolvable:$true] %s130_s29 }
   0x7   :  { %149 = vmatprep.subr.bf16.mxu0 %v186_v8  ;;  %v140_v20 = vld [vmem:[%s253_s4] ss:$0 sm:$0xff]  ;;  %s162_s1 = scalar_lea.vmem %s131_s29, 32  ;;  %p167_p1 = scmp.lt.s32.totalorder %s131_s29, %s131_s29 }
   0x8   :  { %p163_p0 = scmp.ne.s32.totalorder %s131_s29, %s162_s1  ;;  %p168_p2 = scmp.lt.s32.totalorder %s162_s1, %s162_s1 }
   0xa   :  { %150 = vmatpush3.bf16.msra.mxu0 %v159_v9  ;;  %p169_p3 = por %p168_p2, %p167_p1 }
   0xc   :  { %p170_p4 = pnand %p169_p3, %p163_p0 }
  0x90   :  { %v28_v2 = vpop.xlane.xlu0 %27 }
  0x91   :  { %v30_v3 = vmul.f32 0.03125, %v28_v2 }
  0x93   :  { %v31_v4 = vsub.f32 %v22_v0, %v30_v3 }
  0x95   :  { %v32_v5 = vmul.f32 %v31_v4, %v31_v4 }
  0x97   :  { %v33_v6 = vsel %vm25_vm0, %v32_v5, 0.0 }
  0x98   :  { %34 = vadd.xlane.f32.xlu0 %v33_v6 }
 0x125   :  { %v35_v10 = vpop.xlane.xlu0 %34 }
 0x126   :  { %v36_v11 = vmul.f32 0.03125, %v35_v10 }
 0x128   :  { %v37_v12 = vadd.f32 1e-05, %v36_v11 }
 0x12a   :  { %160 = vrsqrt.f32 %v37_v12 }
 0x134   :  { %v161_v13 = vpop.eup %160 }
 0x135   :  { %v39_v15 = vmul.f32 %v161_v13, %v31_v4 }
 0x137   :  { %v46_v17 = vmul.f32 %v138_v14, %v39_v15 }
 0x139   :  { %v53_v18 = vadd.f32 %v139_v16, %v46_v17 }
 0x13b   :  { %v54_v19 = vpack.c.bf16 %v53_v18, %v53_v18 }
 0x13d   :  { %152 = vmatmul.mubr.msk.bf16.vlgmr.msra.gmra.mrb[0].mxu0 %vm78_vm2, %v54_v19 }
 0x210   :  { %v116_v21 = vpop.f32.mrb[0].mxu0 }
 0x211   :  { %v117_v22 = vadd.f32 %v140_v20, %v116_v21  ;;  %v153_v23 = vpop.f32.mrb[1].mxu0 }
 0x212   :  { %v119_v24 = vpop.f32.mrb[2].mxu0 }
 0x213   :  { %v154_v25 = vpop.f32.mrb[3].mxu0  ;;  %123 = vst.msk [vmem:[#allocation2] sm:$0x3] %vm122_vm3, %v117_v22 }
 0x214   :  { %173 = shalt.err (!%p170_p4)
}
 0x215   :  { %s174_s4 = scalar_lea.hbm %s254_s5, 32 }
 0x216   :  { %p175_p5 = scmp.ne.s32.totalorder %s254_s5, %s174_s4  ;;  %p178_p6 = scmp.lt.u32.totalorder %s174_s4, %s254_s5 }
 0x218   :  { %p180_p7 = pnand %p178_p6, %p175_p5 }
 0x21a   :  { %183 = shalt.err (!%p180_p7)
}
 0x21b   :  { %133 = dma.vmem_to_hbm [thread:$0]  %s131_s29, 32, %s254_s5, [#allocation3]  }
 0x21c   :  { %184 = dma.done.wait [#allocation3], 32  }
 0x21d   :  { %185 = vsyncadd [#allocation3], 4294967264 }
 0x21e   :  { %137 = vsyncpa [#allocation3], 1 }

</bundles_post_ra>
